<compile_context>
chip_gen: v7x
topology: tpu7x:2x2x1
jax: 0.10.0
libtpu: 0.0.40
codegen_flags: <defaults>
</compile_context>

<pallas_src>
import functools
import math

import jax
import jax.numpy as jnp
from jax.experimental import pallas as pl
from jax.experimental.pallas import tpu as pltpu


def cross_attn_kernel(x_ref, y_ref,
                      wq_ref, bq_ref,
                      wkv_ref, bkv_ref,
                      wo_ref, bo_ref,
                      o_ref,
                      q_scr, k_scr, vw_scr,
                      *, n_head, d_head, d_embd, lkv, mxu_dtype, approx_recip):
    f32 = jnp.float32
    tq = x_ref.shape[1]
    lkv_pad = k_scr.shape[1]

    # ---- Per-batch block (first q tile only): K projection + fused V @ Wo. ----
    @pl.when(pl.program_id(1) == 0)
    def _():
        y = y_ref[0].astype(mxu_dtype)                               # (Lkv_pad, d_cross)
        # One wide fused K/V matmul, N = 2*d_embd, f32 accumulation.
        kv = jnp.dot(y, wkv_ref[...], preferred_element_type=f32) + bkv_ref[...]
        for h in range(n_head):
            lo = h * d_head
            # Head-major K cache (amortized over all q tiles of this batch elem).
            k_scr[h] = kv[:, lo:lo + d_head].astype(mxu_dtype)
            # Fused V_h @ Wo[h]: lane-dense (Lkv_pad, d_embd) result, cached.
            v_h = kv[:, d_embd + lo:d_embd + lo + d_head].astype(mxu_dtype)
            vw_scr[h] = jnp.dot(v_h, wo_ref[h],
                                preferred_element_type=f32).astype(mxu_dtype)

    # ---- Q projection for this tile (1/sqrt(d_head) pre-folded into Wq/bq). ---
    x = x_ref[0].astype(mxu_dtype)                                   # (TQ, d_embd)
    q = jnp.dot(x, wq_ref[...], preferred_element_type=f32) + bq_ref[...]
    for h in range(n_head):
        q_scr[h] = q[:, h * d_head:(h + 1) * d_head].astype(mxu_dtype)

    q3 = q_scr[...]                                                  # (n_head, TQ, d_head)
    k3 = k_scr[...]                                                  # (n_head, Lkv_pad, d_head)

    # ---- Batched scores over all heads (contraction on last dims, no .T). -----
    s = jnp.einsum('htd,hkd->htk', q3, k3, preferred_element_type=f32)

    # Mask padded key columns (required for correctness once Lkv is padded).
    if lkv < lkv_pad:
        col = jax.lax.broadcasted_iota(jnp.int32, s.shape, 2)
        s = jnp.where(col < lkv, s, -1e30)

    # ---- Numerically stable softmax in f32. -----------------------------------
    s = s - jnp.max(s, axis=-1, keepdims=True)
    p = jnp.exp(s)
    denom = jnp.sum(p, axis=-1, keepdims=True)
    if approx_recip:
        p = p * pl.reciprocal(denom, approx=True)    # EUP slot, nearly free
    else:
        p = p / denom
    p = p.astype(mxu_dtype)

    # ---- Epilogue: out = sum_h P_h @ VW[h] + bo (lane-dense N = d_embd). ------
    acc = jnp.zeros((tq, d_embd), f32)
    for h in range(n_head):
        acc = acc + jnp.dot(p[h], vw_scr[h], preferred_element_type=f32)
    o_ref[0] = (acc + bo_ref[...]).astype(o_ref.dtype)


def _vmem_capacity_bytes():
    """Best-effort per-core VMEM capacity; conservative (v7x) fallback."""
    try:
        info = pltpu.get_tpu_info()
        return int(getattr(info, "vmem_capacity_bytes", 64 << 20))
    except Exception:
        return 64 << 20


def _pick_q_tile(lq, max_tile):
    if lq <= max_tile:
        return lq
    for t in (1024, 768, 512, 384, 256, 128, 64, 32, 16, 8):
        if t <= max_tile and lq % t == 0:
            return t
    return lq


def cross_attention_pallas(x, y, params, n_head, *,
                           mxu_dtype=jnp.bfloat16, q_tile=None, approx_recip=True):
    """x: (B, Lq, d_embd), y: (B, Lkv, d_cross). params holds torch-layout weights."""
    B, Lq, d_embd = x.shape
    _, Lkv, d_cross = y.shape
    assert d_embd % n_head == 0
    d_head = d_embd // n_head

    # Torch-layout (out, in) -> (in, out); fold 1/sqrt(d_head) into Wq/bq;
    # fuse K/V; Wo pre-split head-major.
    scale = 1.0 / math.sqrt(d_head)
    wq = (params["wq"].T * scale).astype(mxu_dtype)                       # (d_embd, d_embd)
    bq = (params["bq"] * scale).reshape(1, d_embd).astype(jnp.float32)
    wkv = jnp.concatenate([params["wk"].T, params["wv"].T],
                          axis=1).astype(mxu_dtype)                        # (d_cross, 2*d_embd)
    bkv = jnp.concatenate([params["bk"], params["bv"]]).reshape(1, 2 * d_embd).astype(jnp.float32)
    wo3 = params["wo"].T.reshape(n_head, d_head, d_embd).astype(mxu_dtype)  # (n_head, d_head, d_embd)
    bo = params["bo"].reshape(1, d_embd).astype(jnp.float32)

    # Pad Lkv to the lane width (128) for lane-dense scores / VW; masked in-kernel.
    lkv_pad = ((Lkv + 127) // 128) * 128
    if lkv_pad != Lkv:
        y = jnp.pad(y, ((0, 0), (0, lkv_pad - Lkv), (0, 0)))

    # Generation-aware tile / VMEM budgeting.
    vmem_cap = _vmem_capacity_bytes()
    big_vmem = vmem_cap >= (100 << 20)          # v5e/v6e (128 MiB) vs v7x (64 MiB)
    TQ = q_tile or _pick_q_tile(Lq, 1024 if big_vmem else 512)
    assert Lq % TQ == 0
    n_qt = Lq // TQ

    kernel = functools.partial(cross_attn_kernel, n_head=n_head, d_head=d_head,
                               d_embd=d_embd, lkv=Lkv, mxu_dtype=mxu_dtype,
                               approx_recip=approx_recip)

    const2d = lambda shape: pl.BlockSpec(shape, lambda b, t: (0, 0))
    const3d = lambda shape: pl.BlockSpec(shape, lambda b, t: (0, 0, 0))

    # Rough VMEM residency estimate (double-buffered blocks + weights + scratch).
    w_elt = jnp.dtype(mxu_dtype).itemsize
    in_elt = x.dtype.itemsize
    act_bytes = 2 * (TQ * d_embd + lkv_pad * d_cross + TQ * d_embd) * in_elt
    w_bytes = 2 * (d_embd * d_embd + d_cross * 2 * d_embd
                   + n_head * d_head * d_embd) * w_elt
    b_bytes = 2 * (5 * d_embd) * 4
    scr_bytes = (n_head * TQ * d_head + n_head * lkv_pad * d_head
                 + n_head * lkv_pad * d_embd) * w_elt
    est = act_bytes + w_bytes + b_bytes + scr_bytes
    cap = (96 << 20) if big_vmem else (40 << 20)
    vmem_limit = int(min(max(2 * est, 32 << 20), cap))

    grid_spec = pltpu.PrefetchScalarGridSpec(
        num_scalar_prefetch=0,
        grid=(B, n_qt),
        in_specs=[
            pl.BlockSpec((1, TQ, d_embd), lambda b, t: (b, t, 0)),       # x (tiled on Lq)
            pl.BlockSpec((1, lkv_pad, d_cross), lambda b, t: (b, 0, 0)), # y (per batch)
            const2d((d_embd, d_embd)), const2d((1, d_embd)),             # Wq*scale, bq*scale
            const2d((d_cross, 2 * d_embd)), const2d((1, 2 * d_embd)),    # fused Wkv, bkv
            const3d((n_head, d_head, d_embd)), const2d((1, d_embd)),     # head-major Wo, bo
        ],
        out_specs=pl.BlockSpec((1, TQ, d_embd), lambda b, t: (b, t, 0)),
        scratch_shapes=[
            pltpu.VMEM((n_head, TQ, d_head), mxu_dtype),       # q (head-major, per tile)
            pltpu.VMEM((n_head, lkv_pad, d_head), mxu_dtype),  # K cache (per batch)
            pltpu.VMEM((n_head, lkv_pad, d_embd), mxu_dtype),  # VW = V @ Wo cache (per batch)
        ],
    )

    # q-tile axis MUST stay the inner "arbitrary" axis (see correctness note above).
    return pl.pallas_call(
        kernel,
        out_shape=jax.ShapeDtypeStruct((B, Lq, d_embd), x.dtype),
        grid_spec=grid_spec,
        compiler_params=pltpu.CompilerParams(
            dimension_semantics=("parallel", "arbitrary"),
            vmem_limit_bytes=vmem_limit),
    )(x, y, wq, bq, wkv, bkv, wo3, bo)


def cross_attention_ref(x, y, params, n_head):
    """Pure-JAX reference mirroring the PyTorch forward exactly (f32)."""
    B, Lq, d_embd = x.shape
    d_head = d_embd // n_head
    q = x @ params["wq"].T + params["bq"]
    k = y @ params["wk"].T + params["bk"]
    v = y @ params["wv"].T + params["bv"]
    q = q.reshape(B, -1, n_head, d_head).transpose(0, 2, 1, 3)
    k = k.reshape(B, -1, n_head, d_head).transpose(0, 2, 1, 3)
    v = v.reshape(B, -1, n_head, d_head).transpose(0, 2, 1, 3)
    w = (q @ k.transpose(0, 1, 3, 2)) / math.sqrt(d_head)
    w = jax.nn.softmax(w, axis=-1)
    o = w @ v
    o = o.transpose(0, 2, 1, 3).reshape(B, Lq, d_embd)
    return o @ params["wo"].T + params["bo"]


def init_params(key, d_embd, d_cross):
    """Deterministic PyTorch-Linear-style init: U(-1/sqrt(fan_in), 1/sqrt(fan_in))."""
    ks = jax.random.split(key, 8)

    def lin(kw, kb, d_in, d_out):
        bound = 1.0 / math.sqrt(d_in)
        w = jax.random.uniform(kw, (d_out, d_in), jnp.float32, -bound, bound)
        b = jax.random.uniform(kb, (d_out,), jnp.float32, -bound, bound)
        return w, b

    wq, bq = lin(ks[0], ks[1], d_embd, d_embd)
    wk, bk = lin(ks[2], ks[3], d_cross, d_embd)
    wv, bv = lin(ks[4], ks[5], d_cross, d_embd)
    wo, bo = lin(ks[6], ks[7], d_embd, d_embd)
    return dict(wq=wq, bq=bq, wk=wk, bk=bk, wv=wv, bv=bv, wo=wo, bo=bo)


if __name__ == "__main__":
    # Small shapes consistent with CrossAttention: n_head=4, d_embd=32, d_cross=24.
    B, Lq, Lkv = 2, 16, 8
    n_head, d_embd, d_cross = 4, 32, 24

    key = jax.random.PRNGKey(0)
    kx, ky, kp = jax.random.split(key, 3)
    x = jax.random.normal(kx, (B, Lq, d_embd), jnp.float32)
    y = jax.random.normal(ky, (B, Lkv, d_cross), jnp.float32)
    params = init_params(kp, d_embd, d_cross)

    out = cross_attention_pallas(x, y, params, n_head)   # bf16 MXU operands, f32 accum
    out = jax.block_until_ready(out)

    ref = cross_attention_ref(x, y, params, n_head)
    assert out.shape == (B, Lq, d_embd)
    # Tolerance covers bf16 MXU operands + approximate (EUP) softmax reciprocal.
    assert jnp.allclose(out, ref, atol=2e-2, rtol=2e-2), "mismatch vs reference"

    print("KERNEL_OK")
</pallas_src>

<mosaic_0001>
module attributes {stable_mosaic.version = 11 : i64} {
  func.func @cross_attn_kernel(%arg0: i32, %arg1: i32, %arg2: memref<1x16x32xf32, #tpu.memory_space<vmem>>, %arg3: memref<1x128x24xf32, #tpu.memory_space<vmem>>, %arg4: memref<32x32xbf16, #tpu.memory_space<vmem>>, %arg5: memref<1x32xf32, #tpu.memory_space<vmem>>, %arg6: memref<24x64xbf16, #tpu.memory_space<vmem>>, %arg7: memref<1x64xf32, #tpu.memory_space<vmem>>, %arg8: memref<4x8x32xbf16, #tpu.memory_space<vmem>>, %arg9: memref<1x32xf32, #tpu.memory_space<vmem>>, %arg10: memref<1x16x32xf32, #tpu.memory_space<vmem>>, %arg11: memref<4x16x8xbf16, #tpu.memory_space<vmem>>, %arg12: memref<4x128x8xbf16, #tpu.memory_space<vmem>>, %arg13: memref<4x128x32xbf16, #tpu.memory_space<vmem>>) attributes {dimension_semantics = [#tpu.dimension_semantics<parallel>, #tpu.dimension_semantics<arbitrary>], iteration_bounds = array<i64: 2, 1>, scalar_prefetch = 0 : i64, scratch_operands = 3 : i64, tpu.core_type = #tpu.core_type<tc>, window_params = [{transform_indices = @transform_0, window_bounds = array<i64: 1, 16, 32>}, {transform_indices = @transform_1, window_bounds = array<i64: 1, 128, 24>}, {pipeline_mode = #tpu.pipeline_mode<synchronous>, transform_indices = @transform_2, window_bounds = array<i64: 32, 32>}, {pipeline_mode = #tpu.pipeline_mode<synchronous>, transform_indices = @transform_3, window_bounds = array<i64: 1, 32>}, {pipeline_mode = #tpu.pipeline_mode<synchronous>, transform_indices = @transform_4, window_bounds = array<i64: 24, 64>}, {pipeline_mode = #tpu.pipeline_mode<synchronous>, transform_indices = @transform_5, window_bounds = array<i64: 1, 64>}, {pipeline_mode = #tpu.pipeline_mode<synchronous>, transform_indices = @transform_6, window_bounds = array<i64: 4, 8, 32>}, {pipeline_mode = #tpu.pipeline_mode<synchronous>, transform_indices = @transform_7, window_bounds = array<i64: 1, 32>}, {transform_indices = @transform_8, window_bounds = array<i64: 1, 16, 32>}]} {
    %c0_i32 = arith.constant 0 : i32
    %0 = arith.cmpi eq, %arg1, %c0_i32 : i32
    %1 = arith.extui %0 : i1 to i32
    %c0_i32_0 = arith.constant 0 : i32
    %2 = arith.cmpi ne, %1, %c0_i32_0 : i32
    scf.if %2 {
      %c0_48 = arith.constant 0 : index
      %c0_49 = arith.constant 0 : index
      %c0_50 = arith.constant 0 : index
      %81 = vector.load %arg3[%c0_48, %c0_49, %c0_50] : memref<1x128x24xf32, #tpu.memory_space<vmem>>, vector<1x128x24xf32>
      %82 = vector.shape_cast %81 : vector<1x128x24xf32> to vector<128x24xf32>
      %83 = arith.truncf %82 : vector<128x24xf32> to vector<128x24xbf16>
      %c0_51 = arith.constant 0 : index
      %c0_52 = arith.constant 0 : index
      %84 = vector.load %arg6[%c0_51, %c0_52] : memref<24x64xbf16, #tpu.memory_space<vmem>>, vector<24x64xbf16>
      %cst_53 = arith.constant dense<0.000000e+00> : vector<128x64xf32>
      %85 = tpu.matmul %83, %84, %cst_53 {dimension_numbers = #tpu.dot_dimension_numbers<[1], [0], [0], [1], [0, 0, 1, 1], [], []>} : vector<128x24xbf16>, vector<24x64xbf16>, vector<128x64xf32> -> vector<128x64xf32>
      %c0_54 = arith.constant 0 : index
      %c0_55 = arith.constant 0 : index
      %86 = vector.load %arg7[%c0_54, %c0_55] : memref<1x64xf32, #tpu.memory_space<vmem>>, vector<1x64xf32>
      %87 = vector.broadcast %86 : vector<1x64xf32> to vector<128x64xf32>
      %88 = arith.addf %85, %87 : vector<128x64xf32>
      %89 = vector.extract_strided_slice %88 {offsets = [0, 0], sizes = [128, 8], strides = [1, 1]} : vector<128x64xf32> to vector<128x8xf32>
      %90 = arith.truncf %89 : vector<128x8xf32> to vector<128x8xbf16>
      %c0_56 = arith.constant 0 : index
      %c0_57 = arith.constant 0 : index
      %c0_58 = arith.constant 0 : index
      %91 = vector.load %arg12[%c0_56, %c0_57, %c0_58] : memref<4x128x8xbf16, #tpu.memory_space<vmem>>, vector<1x128x8xbf16>
      %92 = vector.shape_cast %91 : vector<1x128x8xbf16> to vector<128x8xbf16>
      %93 = vector.shape_cast %90 : vector<128x8xbf16> to vector<1x128x8xbf16>
      tpu.vector_store %arg12[%c0_56, %c0_57, %c0_58], %93 {strides = array<i32>} : memref<4x128x8xbf16, #tpu.memory_space<vmem>>, vector<1x128x8xbf16>,
      %94 = vector.extract_strided_slice %88 {offsets = [0, 32], sizes = [128, 8], strides = [1, 1]} : vector<128x64xf32> to vector<128x8xf32>
      %95 = arith.truncf %94 : vector<128x8xf32> to vector<128x8xbf16>
      %c0_59 = arith.constant 0 : index
      %c0_60 = arith.constant 0 : index
      %c0_61 = arith.constant 0 : index
      %96 = vector.load %arg8[%c0_59, %c0_60, %c0_61] : memref<4x8x32xbf16, #tpu.memory_space<vmem>>, vector<1x8x32xbf16>
      %97 = vector.shape_cast %96 : vector<1x8x32xbf16> to vector<8x32xbf16>
      %cst_62 = arith.constant dense<0.000000e+00> : vector<128x32xf32>
      %98 = tpu.matmul %95, %97, %cst_62 {dimension_numbers = #tpu.dot_dimension_numbers<[1], [0], [0], [1], [0, 0, 1, 1], [], []>} : vector<128x8xbf16>, vector<8x32xbf16>, vector<128x32xf32> -> vector<128x32xf32>
      %99 = arith.truncf %98 : vector<128x32xf32> to vector<128x32xbf16>
      %c0_63 = arith.constant 0 : index
      %c0_64 = arith.constant 0 : index
      %c0_65 = arith.constant 0 : index
      %100 = vector.load %arg13[%c0_63, %c0_64, %c0_65] : memref<4x128x32xbf16, #tpu.memory_space<vmem>>, vector<1x128x32xbf16>
      %101 = vector.shape_cast %100 : vector<1x128x32xbf16> to vector<128x32xbf16>
      %102 = vector.shape_cast %99 : vector<128x32xbf16> to vector<1x128x32xbf16>
      tpu.vector_store %arg13[%c0_63, %c0_64, %c0_65], %102 {strides = array<i32>} : memref<4x128x32xbf16, #tpu.memory_space<vmem>>, vector<1x128x32xbf16>,
      %103 = vector.extract_strided_slice %88 {offsets = [0, 8], sizes = [128, 8], strides = [1, 1]} : vector<128x64xf32> to vector<128x8xf32>
      %104 = arith.truncf %103 : vector<128x8xf32> to vector<128x8xbf16>
      %c1_66 = arith.constant 1 : index
      %c0_67 = arith.constant 0 : index
      %c0_68 = arith.constant 0 : index
      %105 = vector.load %arg12[%c1_66, %c0_67, %c0_68] : memref<4x128x8xbf16, #tpu.memory_space<vmem>>, vector<1x128x8xbf16>
      %106 = vector.shape_cast %105 : vector<1x128x8xbf16> to vector<128x8xbf16>
      %107 = vector.shape_cast %104 : vector<128x8xbf16> to vector<1x128x8xbf16>
      tpu.vector_store %arg12[%c1_66, %c0_67, %c0_68], %107 {strides = array<i32>} : memref<4x128x8xbf16, #tpu.memory_space<vmem>>, vector<1x128x8xbf16>,
      %108 = vector.extract_strided_slice %88 {offsets = [0, 40], sizes = [128, 8], strides = [1, 1]} : vector<128x64xf32> to vector<128x8xf32>
      %109 = arith.truncf %108 : vector<128x8xf32> to vector<128x8xbf16>
      %c1_69 = arith.constant 1 : index
      %c0_70 = arith.constant 0 : index
      %c0_71 = arith.constant 0 : index
      %110 = vector.load %arg8[%c1_69, %c0_70, %c0_71] : memref<4x8x32xbf16, #tpu.memory_space<vmem>>, vector<1x8x32xbf16>
      %111 = vector.shape_cast %110 : vector<1x8x32xbf16> to vector<8x32xbf16>
      %cst_72 = arith.constant dense<0.000000e+00> : vector<128x32xf32>
      %112 = tpu.matmul %109, %111, %cst_72 {dimension_numbers = #tpu.dot_dimension_numbers<[1], [0], [0], [1], [0, 0, 1, 1], [], []>} : vector<128x8xbf16>, vector<8x32xbf16>, vector<128x32xf32> -> vector<128x32xf32>
      %113 = arith.truncf %112 : vector<128x32xf32> to vector<128x32xbf16>
      %c1_73 = arith.constant 1 : index
      %c0_74 = arith.constant 0 : index
      %c0_75 = arith.constant 0 : index
      %114 = vector.load %arg13[%c1_73, %c0_74, %c0_75] : memref<4x128x32xbf16, #tpu.memory_space<vmem>>, vector<1x128x32xbf16>
      %115 = vector.shape_cast %114 : vector<1x128x32xbf16> to vector<128x32xbf16>
      %116 = vector.shape_cast %113 : vector<128x32xbf16> to vector<1x128x32xbf16>
      tpu.vector_store %arg13[%c1_73, %c0_74, %c0_75], %116 {strides = array<i32>} : memref<4x128x32xbf16, #tpu.memory_space<vmem>>, vector<1x128x32xbf16>,
      %117 = vector.extract_strided_slice %88 {offsets = [0, 16], sizes = [128, 8], strides = [1, 1]} : vector<128x64xf32> to vector<128x8xf32>
      %118 = arith.truncf %117 : vector<128x8xf32> to vector<128x8xbf16>
      %c2_76 = arith.constant 2 : index
      %c0_77 = arith.constant 0 : index
      %c0_78 = arith.constant 0 : index
      %119 = vector.load %arg12[%c2_76, %c0_77, %c0_78] : memref<4x128x8xbf16, #tpu.memory_space<vmem>>, vector<1x128x8xbf16>
      %120 = vector.shape_cast %119 : vector<1x128x8xbf16> to vector<128x8xbf16>
      %121 = vector.shape_cast %118 : vector<128x8xbf16> to vector<1x128x8xbf16>
      tpu.vector_store %arg12[%c2_76, %c0_77, %c0_78], %121 {strides = array<i32>} : memref<4x128x8xbf16, #tpu.memory_space<vmem>>, vector<1x128x8xbf16>,
      %122 = vector.extract_strided_slice %88 {offsets = [0, 48], sizes = [128, 8], strides = [1, 1]} : vector<128x64xf32> to vector<128x8xf32>
      %123 = arith.truncf %122 : vector<128x8xf32> to vector<128x8xbf16>
      %c2_79 = arith.constant 2 : index
      %c0_80 = arith.constant 0 : index
      %c0_81 = arith.constant 0 : index
      %124 = vector.load %arg8[%c2_79, %c0_80, %c0_81] : memref<4x8x32xbf16, #tpu.memory_space<vmem>>, vector<1x8x32xbf16>
      %125 = vector.shape_cast %124 : vector<1x8x32xbf16> to vector<8x32xbf16>
      %cst_82 = arith.constant dense<0.000000e+00> : vector<128x32xf32>
      %126 = tpu.matmul %123, %125, %cst_82 {dimension_numbers = #tpu.dot_dimension_numbers<[1], [0], [0], [1], [0, 0, 1, 1], [], []>} : vector<128x8xbf16>, vector<8x32xbf16>, vector<128x32xf32> -> vector<128x32xf32>
      %127 = arith.truncf %126 : vector<128x32xf32> to vector<128x32xbf16>
      %c2_83 = arith.constant 2 : index
      %c0_84 = arith.constant 0 : index
      %c0_85 = arith.constant 0 : index
      %128 = vector.load %arg13[%c2_83, %c0_84, %c0_85] : memref<4x128x32xbf16, #tpu.memory_space<vmem>>, vector<1x128x32xbf16>
      %129 = vector.shape_cast %128 : vector<1x128x32xbf16> to vector<128x32xbf16>
      %130 = vector.shape_cast %127 : vector<128x32xbf16> to vector<1x128x32xbf16>
      tpu.vector_store %arg13[%c2_83, %c0_84, %c0_85], %130 {strides = array<i32>} : memref<4x128x32xbf16, #tpu.memory_space<vmem>>, vector<1x128x32xbf16>,
      %131 = vector.extract_strided_slice %88 {offsets = [0, 24], sizes = [128, 8], strides = [1, 1]} : vector<128x64xf32> to vector<128x8xf32>
      %132 = arith.truncf %131 : vector<128x8xf32> to vector<128x8xbf16>
      %c3_86 = arith.constant 3 : index
      %c0_87 = arith.constant 0 : index
      %c0_88 = arith.constant 0 : index
      %133 = vector.load %arg12[%c3_86, %c0_87, %c0_88] : memref<4x128x8xbf16, #tpu.memory_space<vmem>>, vector<1x128x8xbf16>
      %134 = vector.shape_cast %133 : vector<1x128x8xbf16> to vector<128x8xbf16>
      %135 = vector.shape_cast %132 : vector<128x8xbf16> to vector<1x128x8xbf16>
      tpu.vector_store %arg12[%c3_86, %c0_87, %c0_88], %135 {strides = array<i32>} : memref<4x128x8xbf16, #tpu.memory_space<vmem>>, vector<1x128x8xbf16>,
      %136 = vector.extract_strided_slice %88 {offsets = [0, 56], sizes = [128, 8], strides = [1, 1]} : vector<128x64xf32> to vector<128x8xf32>
      %137 = arith.truncf %136 : vector<128x8xf32> to vector<128x8xbf16>
      %c3_89 = arith.constant 3 : index
      %c0_90 = arith.constant 0 : index
      %c0_91 = arith.constant 0 : index
      %138 = vector.load %arg8[%c3_89, %c0_90, %c0_91] : memref<4x8x32xbf16, #tpu.memory_space<vmem>>, vector<1x8x32xbf16>
      %139 = vector.shape_cast %138 : vector<1x8x32xbf16> to vector<8x32xbf16>
      %cst_92 = arith.constant dense<0.000000e+00> : vector<128x32xf32>
      %140 = tpu.matmul %137, %139, %cst_92 {dimension_numbers = #tpu.dot_dimension_numbers<[1], [0], [0], [1], [0, 0, 1, 1], [], []>} : vector<128x8xbf16>, vector<8x32xbf16>, vector<128x32xf32> -> vector<128x32xf32>
      %141 = arith.truncf %140 : vector<128x32xf32> to vector<128x32xbf16>
      %c3_93 = arith.constant 3 : index
      %c0_94 = arith.constant 0 : index
      %c0_95 = arith.constant 0 : index
      %142 = vector.load %arg13[%c3_93, %c0_94, %c0_95] : memref<4x128x32xbf16, #tpu.memory_space<vmem>>, vector<1x128x32xbf16>
      %143 = vector.shape_cast %142 : vector<1x128x32xbf16> to vector<128x32xbf16>
      %144 = vector.shape_cast %141 : vector<128x32xbf16> to vector<1x128x32xbf16>
      tpu.vector_store %arg13[%c3_93, %c0_94, %c0_95], %144 {strides = array<i32>} : memref<4x128x32xbf16, #tpu.memory_space<vmem>>, vector<1x128x32xbf16>,
    } else {
    }
    %c0 = arith.constant 0 : index
    %c0_1 = arith.constant 0 : index
    %c0_2 = arith.constant 0 : index
    %3 = vector.load %arg2[%c0, %c0_1, %c0_2] : memref<1x16x32xf32, #tpu.memory_space<vmem>>, vector<1x16x32xf32>
    %4 = vector.shape_cast %3 : vector<1x16x32xf32> to vector<16x32xf32>
    %5 = arith.truncf %4 : vector<16x32xf32> to vector<16x32xbf16>
    %c0_3 = arith.constant 0 : index
    %c0_4 = arith.constant 0 : index
    %6 = vector.load %arg4[%c0_3, %c0_4] : memref<32x32xbf16, #tpu.memory_space<vmem>>, vector<32x32xbf16>
    %cst = arith.constant dense<0.000000e+00> : vector<16x32xf32>
    %7 = tpu.matmul %5, %6, %cst {dimension_numbers = #tpu.dot_dimension_numbers<[1], [0], [0], [1], [0, 0, 1, 1], [], []>} : vector<16x32xbf16>, vector<32x32xbf16>, vector<16x32xf32> -> vector<16x32xf32>
    %c0_5 = arith.constant 0 : index
    %c0_6 = arith.constant 0 : index
    %8 = vector.load %arg5[%c0_5, %c0_6] : memref<1x32xf32, #tpu.memory_space<vmem>>, vector<1x32xf32>
    %9 = vector.broadcast %8 : vector<1x32xf32> to vector<16x32xf32>
    %10 = arith.addf %7, %9 : vector<16x32xf32>
    %11 = vector.extract_strided_slice %10 {offsets = [0, 0], sizes = [16, 8], strides = [1, 1]} : vector<16x32xf32> to vector<16x8xf32>
    %12 = arith.truncf %11 : vector<16x8xf32> to vector<16x8xbf16>
    %c0_7 = arith.constant 0 : index
    %c0_8 = arith.constant 0 : index
    %c0_9 = arith.constant 0 : index
    %13 = vector.load %arg11[%c0_7, %c0_8, %c0_9] : memref<4x16x8xbf16, #tpu.memory_space<vmem>>, vector<1x16x8xbf16>
    %14 = vector.shape_cast %13 : vector<1x16x8xbf16> to vector<16x8xbf16>
    %15 = vector.shape_cast %12 : vector<16x8xbf16> to vector<1x16x8xbf16>
    tpu.vector_store %arg11[%c0_7, %c0_8, %c0_9], %15 {strides = array<i32>} : memref<4x16x8xbf16, #tpu.memory_space<vmem>>, vector<1x16x8xbf16>,
    %16 = vector.extract_strided_slice %10 {offsets = [0, 8], sizes = [16, 8], strides = [1, 1]} : vector<16x32xf32> to vector<16x8xf32>
    %17 = arith.truncf %16 : vector<16x8xf32> to vector<16x8xbf16>
    %c1 = arith.constant 1 : index
    %c0_10 = arith.constant 0 : index
    %c0_11 = arith.constant 0 : index
    %18 = vector.load %arg11[%c1, %c0_10, %c0_11] : memref<4x16x8xbf16, #tpu.memory_space<vmem>>, vector<1x16x8xbf16>
    %19 = vector.shape_cast %18 : vector<1x16x8xbf16> to vector<16x8xbf16>
    %20 = vector.shape_cast %17 : vector<16x8xbf16> to vector<1x16x8xbf16>
    tpu.vector_store %arg11[%c1, %c0_10, %c0_11], %20 {strides = array<i32>} : memref<4x16x8xbf16, #tpu.memory_space<vmem>>, vector<1x16x8xbf16>,
    %21 = vector.extract_strided_slice %10 {offsets = [0, 16], sizes = [16, 8], strides = [1, 1]} : vector<16x32xf32> to vector<16x8xf32>
    %22 = arith.truncf %21 : vector<16x8xf32> to vector<16x8xbf16>
    %c2 = arith.constant 2 : index
    %c0_12 = arith.constant 0 : index
    %c0_13 = arith.constant 0 : index
    %23 = vector.load %arg11[%c2, %c0_12, %c0_13] : memref<4x16x8xbf16, #tpu.memory_space<vmem>>, vector<1x16x8xbf16>
    %24 = vector.shape_cast %23 : vector<1x16x8xbf16> to vector<16x8xbf16>
    %25 = vector.shape_cast %22 : vector<16x8xbf16> to vector<1x16x8xbf16>
    tpu.vector_store %arg11[%c2, %c0_12, %c0_13], %25 {strides = array<i32>} : memref<4x16x8xbf16, #tpu.memory_space<vmem>>, vector<1x16x8xbf16>,
    %26 = vector.extract_strided_slice %10 {offsets = [0, 24], sizes = [16, 8], strides = [1, 1]} : vector<16x32xf32> to vector<16x8xf32>
    %27 = arith.truncf %26 : vector<16x8xf32> to vector<16x8xbf16>
    %c3 = arith.constant 3 : index
    %c0_14 = arith.constant 0 : index
    %c0_15 = arith.constant 0 : index
    %28 = vector.load %arg11[%c3, %c0_14, %c0_15] : memref<4x16x8xbf16, #tpu.memory_space<vmem>>, vector<1x16x8xbf16>
    %29 = vector.shape_cast %28 : vector<1x16x8xbf16> to vector<16x8xbf16>
    %30 = vector.shape_cast %27 : vector<16x8xbf16> to vector<1x16x8xbf16>
    tpu.vector_store %arg11[%c3, %c0_14, %c0_15], %30 {strides = array<i32>} : memref<4x16x8xbf16, #tpu.memory_space<vmem>>, vector<1x16x8xbf16>,
    %c0_16 = arith.constant 0 : index
    %c0_17 = arith.constant 0 : index
    %c0_18 = arith.constant 0 : index
    %31 = vector.load %arg11[%c0_16, %c0_17, %c0_18] : memref<4x16x8xbf16, #tpu.memory_space<vmem>>, vector<4x16x8xbf16>
    %c0_19 = arith.constant 0 : index
    %c0_20 = arith.constant 0 : index
    %c0_21 = arith.constant 0 : index
    %32 = vector.load %arg12[%c0_19, %c0_20, %c0_21] : memref<4x128x8xbf16, #tpu.memory_space<vmem>>, vector<4x128x8xbf16>
    "tpu.trace_start"() <{level = 10 : i32, message = "htd,hkd->htk"}> : () -> ()
    %cst_22 = arith.constant dense<0.000000e+00> : vector<4x16x128xf32>
    %33 = tpu.matmul %31, %32, %cst_22 {dimension_numbers = #tpu.dot_dimension_numbers<[2], [2], [1], [1], [0, 0, 0, 1, 1, 1], [0], [0]>} : vector<4x16x8xbf16>, vector<4x128x8xbf16>, vector<4x16x128xf32> -> vector<4x16x128xf32>
    "tpu.trace_stop"() : () -> ()
    %34 = tpu.iota {dimensions = array<i32: 2>} : vector<4x16x128xi32>
    %c8_i32 = arith.constant 8 : i32
    %35 = vector.broadcast %c8_i32 : i32 to vector<4x16x128xi32>
    %36 = arith.cmpi slt, %34, %35 : vector<4x16x128xi32>
    %cst_23 = arith.constant -1.000000e+30 : f32
    %37 = vector.broadcast %cst_23 : f32 to vector<4x16x128xf32>
    %38 = arith.select %36, %33, %37 : vector<4x16x128xi1>, vector<4x16x128xf32>
    %cst_24 = arith.constant dense<0xFF800000> : vector<4x16xf32>
    %39 = vector.multi_reduction <maximumf>, %38, %cst_24 [2] : vector<4x16x128xf32> to vector<4x16xf32>
    %40 = vector.shape_cast %39 : vector<4x16xf32> to vector<4x16x1xf32>
    %41 = vector.broadcast %40 : vector<4x16x1xf32> to vector<4x16x128xf32>
    %42 = arith.subf %38, %41 : vector<4x16x128xf32>
    %43 = math.exp %42 : vector<4x16x128xf32>
    %cst_25 = arith.constant dense<0.000000e+00> : vector<4x16xf32>
    %44 = vector.multi_reduction <add>, %43, %cst_25 [2] : vector<4x16x128xf32> to vector<4x16xf32>
    %45 = vector.shape_cast %44 : vector<4x16xf32> to vector<4x16x1xf32>
    %46 = tpu.reciprocal %45 {approx = true} : vector<4x16x1xf32> -> vector<4x16x1xf32>
    %47 = vector.broadcast %46 : vector<4x16x1xf32> to vector<4x16x128xf32>
    %48 = arith.mulf %43, %47 : vector<4x16x128xf32>
    %49 = arith.truncf %48 : vector<4x16x128xf32> to vector<4x16x128xbf16>
    %cst_26 = arith.constant 0.000000e+00 : f32
    %50 = vector.broadcast %cst_26 : f32 to vector<16x32xf32>
    %51 = vector.extract_strided_slice %49 {offsets = [0, 0, 0], sizes = [1, 16, 128], strides = [1, 1, 1]} : vector<4x16x128xbf16> to vector<1x16x128xbf16>
    %52 = vector.shape_cast %51 : vector<1x16x128xbf16> to vector<16x128xbf16>
    %c0_27 = arith.constant 0 : index
    %c0_28 = arith.constant 0 : index
    %c0_29 = arith.constant 0 : index
    %53 = vector.load %arg13[%c0_27, %c0_28, %c0_29] : memref<4x128x32xbf16, #tpu.memory_space<vmem>>, vector<1x128x32xbf16>
    %54 = vector.shape_cast %53 : vector<1x128x32xbf16> to vector<128x32xbf16>
    %cst_30 = arith.constant dense<0.000000e+00> : vector<16x32xf32>
    %55 = tpu.matmul %52, %54, %cst_30 {dimension_numbers = #tpu.dot_dimension_numbers<[1], [0], [0], [1], [0, 0, 1, 1], [], []>} : vector<16x128xbf16>, vector<128x32xbf16>, vector<16x32xf32> -> vector<16x32xf32>
    %56 = arith.addf %50, %55 : vector<16x32xf32>
    %57 = vector.extract_strided_slice %49 {offsets = [1, 0, 0], sizes = [1, 16, 128], strides = [1, 1, 1]} : vector<4x16x128xbf16> to vector<1x16x128xbf16>
    %58 = vector.shape_cast %57 : vector<1x16x128xbf16> to vector<16x128xbf16>
    %c1_31 = arith.constant 1 : index
    %c0_32 = arith.constant 0 : index
    %c0_33 = arith.constant 0 : index
    %59 = vector.load %arg13[%c1_31, %c0_32, %c0_33] : memref<4x128x32xbf16, #tpu.memory_space<vmem>>, vector<1x128x32xbf16>
    %60 = vector.shape_cast %59 : vector<1x128x32xbf16> to vector<128x32xbf16>
    %cst_34 = arith.constant dense<0.000000e+00> : vector<16x32xf32>
    %61 = tpu.matmul %58, %60, %cst_34 {dimension_numbers = #tpu.dot_dimension_numbers<[1], [0], [0], [1], [0, 0, 1, 1], [], []>} : vector<16x128xbf16>, vector<128x32xbf16>, vector<16x32xf32> -> vector<16x32xf32>
    %62 = arith.addf %56, %61 : vector<16x32xf32>
    %63 = vector.extract_strided_slice %49 {offsets = [2, 0, 0], sizes = [1, 16, 128], strides = [1, 1, 1]} : vector<4x16x128xbf16> to vector<1x16x128xbf16>
    %64 = vector.shape_cast %63 : vector<1x16x128xbf16> to vector<16x128xbf16>
    %c2_35 = arith.constant 2 : index
    %c0_36 = arith.constant 0 : index
    %c0_37 = arith.constant 0 : index
    %65 = vector.load %arg13[%c2_35, %c0_36, %c0_37] : memref<4x128x32xbf16, #tpu.memory_space<vmem>>, vector<1x128x32xbf16>
    %66 = vector.shape_cast %65 : vector<1x128x32xbf16> to vector<128x32xbf16>
    %cst_38 = arith.constant dense<0.000000e+00> : vector<16x32xf32>
    %67 = tpu.matmul %64, %66, %cst_38 {dimension_numbers = #tpu.dot_dimension_numbers<[1], [0], [0], [1], [0, 0, 1, 1], [], []>} : vector<16x128xbf16>, vector<128x32xbf16>, vector<16x32xf32> -> vector<16x32xf32>
    %68 = arith.addf %62, %67 : vector<16x32xf32>
    %69 = vector.extract_strided_slice %49 {offsets = [3, 0, 0], sizes = [1, 16, 128], strides = [1, 1, 1]} : vector<4x16x128xbf16> to vector<1x16x128xbf16>
    %70 = vector.shape_cast %69 : vector<1x16x128xbf16> to vector<16x128xbf16>
    %c3_39 = arith.constant 3 : index
    %c0_40 = arith.constant 0 : index
    %c0_41 = arith.constant 0 : index
    %71 = vector.load %arg13[%c3_39, %c0_40, %c0_41] : memref<4x128x32xbf16, #tpu.memory_space<vmem>>, vector<1x128x32xbf16>
    %72 = vector.shape_cast %71 : vector<1x128x32xbf16> to vector<128x32xbf16>
    %cst_42 = arith.constant dense<0.000000e+00> : vector<16x32xf32>
    %73 = tpu.matmul %70, %72, %cst_42 {dimension_numbers = #tpu.dot_dimension_numbers<[1], [0], [0], [1], [0, 0, 1, 1], [], []>} : vector<16x128xbf16>, vector<128x32xbf16>, vector<16x32xf32> -> vector<16x32xf32>
    %74 = arith.addf %68, %73 : vector<16x32xf32>
    %c0_43 = arith.constant 0 : index
    %c0_44 = arith.constant 0 : index
    %75 = vector.load %arg9[%c0_43, %c0_44] : memref<1x32xf32, #tpu.memory_space<vmem>>, vector<1x32xf32>
    %76 = vector.broadcast %75 : vector<1x32xf32> to vector<16x32xf32>
    %77 = arith.addf %74, %76 : vector<16x32xf32>
    %c0_45 = arith.constant 0 : index
    %c0_46 = arith.constant 0 : index
    %c0_47 = arith.constant 0 : index
    %78 = vector.load %arg10[%c0_45, %c0_46, %c0_47] : memref<1x16x32xf32, #tpu.memory_space<vmem>>, vector<1x16x32xf32>
    %79 = vector.shape_cast %78 : vector<1x16x32xf32> to vector<16x32xf32>
    %80 = vector.shape_cast %77 : vector<16x32xf32> to vector<1x16x32xf32>
    tpu.vector_store %arg10[%c0_45, %c0_46, %c0_47], %80 {strides = array<i32>} : memref<1x16x32xf32, #tpu.memory_space<vmem>>, vector<1x16x32xf32>,
    return
  }
  func.func @transform_0(%arg0: i32, %arg1: i32) -> (i32, i32, i32) {
    %c0_i32 = arith.constant 0 : i32
    %c0_i32_0 = arith.constant 0 : i32
    return %arg0, %arg1, %c0_i32 : i32, i32, i32
  }
  func.func @transform_1(%arg0: i32, %arg1: i32) -> (i32, i32, i32) {
    %c0_i32 = arith.constant 0 : i32
    %c0_i32_0 = arith.constant 0 : i32
    %c0_i32_1 = arith.constant 0 : i32
    return %arg0, %c0_i32, %c0_i32_0 : i32, i32, i32
  }
  func.func @transform_2(%arg0: i32, %arg1: i32) -> (i32, i32) {
    %c0_i32 = arith.constant 0 : i32
    %c0_i32_0 = arith.constant 0 : i32
    %c0_i32_1 = arith.constant 0 : i32
    return %c0_i32, %c0_i32_0 : i32, i32
  }
  func.func @transform_3(%arg0: i32, %arg1: i32) -> (i32, i32) {
    %c0_i32 = arith.constant 0 : i32
    %c0_i32_0 = arith.constant 0 : i32
    %c0_i32_1 = arith.constant 0 : i32
    return %c0_i32, %c0_i32_0 : i32, i32
  }
  func.func @transform_4(%arg0: i32, %arg1: i32) -> (i32, i32) {
    %c0_i32 = arith.constant 0 : i32
    %c0_i32_0 = arith.constant 0 : i32
    %c0_i32_1 = arith.constant 0 : i32
    return %c0_i32, %c0_i32_0 : i32, i32
  }
  func.func @transform_5(%arg0: i32, %arg1: i32) -> (i32, i32) {
    %c0_i32 = arith.constant 0 : i32
    %c0_i32_0 = arith.constant 0 : i32
    %c0_i32_1 = arith.constant 0 : i32
    return %c0_i32, %c0_i32_0 : i32, i32
  }
  func.func @transform_6(%arg0: i32, %arg1: i32) -> (i32, i32, i32) {
    %c0_i32 = arith.constant 0 : i32
    %c0_i32_0 = arith.constant 0 : i32
    %c0_i32_1 = arith.constant 0 : i32
    %c0_i32_2 = arith.constant 0 : i32
    return %c0_i32, %c0_i32_0, %c0_i32_1 : i32, i32, i32
  }
  func.func @transform_7(%arg0: i32, %arg1: i32) -> (i32, i32) {
    %c0_i32 = arith.constant 0 : i32
    %c0_i32_0 = arith.constant 0 : i32
    %c0_i32_1 = arith.constant 0 : i32
    return %c0_i32, %c0_i32_0 : i32, i32
  }
  func.func @transform_8(%arg0: i32, %arg1: i32) -> (i32, i32, i32) {
    %c0_i32 = arith.constant 0 : i32
    %c0_i32_0 = arith.constant 0 : i32
    return %arg0, %arg1, %c0_i32 : i32, i32, i32
  }
}

</mosaic_0001>

<bundles_post_ra>
// kernel: tpu_custom_call.1
= control target key start
LH: loop header
LB: loop body
LE: loop exit
PB: predicated region body
PF: predicated region fallthrough
CT: control target
= control target key end

     0   :  { %13 = vsyncpa [#allocation6], 0  ;;  %s3349_s0 = inlined_call_operand.vmem [shape: f32[2,16,32], index: 0, kind: input, shape index: {}]   ;;  %s3350_s1 = inlined_call_operand.vmem [shape: f32[2,128,24], index: 1, kind: input, shape index: {}]   ;;  %s3351_s2 = inlined_call_operand.vmem [shape: bf16[32,32], index: 2, kind: input, shape index: {}]   ;;  %s3352_s3 = inlined_call_operand.vmem [shape: f32[1,32], index: 3, kind: input, shape index: {}]   ;;  %s3353_s4 = inlined_call_operand.vmem [shape: bf16[24,64], index: 4, kind: input, shape index: {}]   ;;  %s3354_s5 = inlined_call_operand.vmem [shape: f32[1,64], index: 5, kind: input, shape index: {}]   ;;  %s3355_s6 = inlined_call_operand.vmem [shape: bf16[4,8,32], index: 6, kind: input, shape index: {}]   ;;  %s3356_s7 = inlined_call_operand.vmem [shape: f32[1,32], index: 7, kind: input, shape index: {}]   ;;  %s3357_s8 = inlined_call_operand.hbm [shape: f32[2,16,32], index: 8, kind: output, shape index: {}]  }
   0x1   :  { %15 = vsyncpa [#allocation6 + $0x1], 0  ;;  %s2792_s27 = smov 0   ;;  %s2794_s28 = smov 0  }
   0x2   :  { %s2796_s29 = smov 0   ;;  %s2798_s30 = smov 0  }
   0x3   :  { %s2800_s9 = smov 0   ;;  %s2802_s10 = smov 0  }
   0x4 LB: > { %s2094_s11 = sadd.s32 4294967295, %s2733_s10   ;;  %s2095_s12 = sadd.s32 4294967294, %s2733_s10   ;;  %s2733_s10 = sphi %s2802_s10, %s21_s10   ;;  %s2729_s9 = sphi %s2800_s9, %s3364_s9   ;;  %s2725_s30 = sphi %s2798_s30, %s3363_s30   ;;  %s2721_s29 = sphi %s2796_s29, %s3362_s29   ;;  %s2717_s28 = sphi %s2794_s28, %s3361_s28   ;;  %s2713_s27 = sphi %s2792_s27, %s3360_s27  }
   0x5   : > { %s33_s13 = sadd.s32 1, %s2729_s9  ;;  %s222_s14 = sadd.s32 1, %s2721_s29 }
   0x6   : > { %p35_p0 = scmp.ge.s32.totalorder %s33_s13, 2  ;;  %p232_p1 = scmp.ne.s32.totalorder %s2721_s29, %s2717_s28 }
   0x7   : > { %p233_p2 = scmp.eq.s32.totalorder %s2094_s11, 1  ;;  %p238_p3 = scmp.ne.s32.totalorder %s2717_s28, %s2713_s27 }
   0x8   : > { %s3366_s13 = smov (%p35_p0, %s33_s13), 0  ;;  %p239_p5 = scmp.eq.s32.totalorder %s2095_s12, 1 }
   0x9   : > { %p2832_p4 = por %p233_p2, %p232_p1  ;;  %s217_s16 = ssub.s32 %s2729_s9, %s3366_s13 }
   0xa   : > { %p2098_p6 = scmp.ge.s32.totalorder %s2733_s10, 1  ;;  %p220_p7 = scmp.eq.s32.totalorder %s217_s16, 0 }
   0xb   : > { %p2839_p8 = por %p239_p5, %p238_p3  ;;  %p296_p9 = scmp.lt.s32.totalorder %s2733_s10, 3 }
   0xc   : > { %s2845_s18 = scalar_select %p220_p7, %s2721_s29, %s222_s14  }
   0xd   : > { %p297_p10 = pnand %p2098_p6, %p296_p9 }
   0xe   : > { %v2619_v0 = vld [vmem:[%s3353_s4] sm:$0xff] (!%p297_p10)   ;;  %v2620_v1 = vld [vmem:[%s3353_s4 + $0x8] ss:$0 sps:$4 sm:$0xff] (!%p297_p10)   ;;  %vm428_vm0 = vcmask (!%p297_p10), 1043456   ;;  %p340_p11 = scmp.lt.s32.totalorder (!%p297_p10), %s2725_s30, 1  ;;  %vm403_vm1 = vcmask (!%p297_p10), 195584  }
   0xf   : > { %300 = sbr.rel (%p297_p10) target bundleno = 1567 (0x61f), region = 52  ;;  %2288 = vmatprep.subr.bf16.mxu0 (!%p297_p10), %v2619_v0  ;;  %v430_v2 = vsel (!%p297_p10), %vm428_vm0, %v2620_v1, 0  ;;  %v2132_v27 = vld [vmem:[%s3355_s6 + $0x8] sm:$0xf] (!%p297_p10)  ;;  %v2735_v29 = vmov (!%p297_p10), 0.0   ;;  %vm537_vm2 = vcmask (!%p297_p10), 64512  }
  0x10   : > { %2289 = vmatpush3.bf16.msra.mxu0 (!%p297_p10), %v2619_v0  ;;  %v980_v28 = vsel (!%p297_p10), %vm428_vm0, %v2132_v27, 0  ;;  %v2104_v31 = vld [vmem:[%s3354_s5] ss:$0 sm:$0xff] (!%p297_p10)  ;;  %s2736_s20 = smov (!%p297_p10), 80   ;;  %s2739_s12 = smov (!%p297_p10), 72   ;;  %vm2743_vm3 = vmmov (!%p297_p10), 0  }
  0x11   : > { %2548 = vmatprep.subr.msk.bf16.mxu0 (!%p297_p10), %vm428_vm0, %v2620_v1  ;;  %v546_v58 = vld [vmem:[%s3355_s6] sm:$0xf] (!%p297_p10)  ;;  %s2740_s14 = smov (!%p297_p10), 120   ;;  %s2741_s16 = smov (!%p297_p10), 112   ;;  %vm703_vm4 = vcmask (!%p297_p10), 261120  }
  0x12   : > { %2549 = vmatprep.subr.msk.bf16.mxu1 (!%p297_p10), %vm428_vm0, %v546_v58  ;;  %v596_v60 = vsel (!%p297_p10), %vm428_vm0, %v546_v58, 0  ;;  %s2742_s19 = smov (!%p297_p10), 104   ;;  %s2744_s22 = smov (!%p297_p10), [#allocation5]  }
  0x13   : > { %2309 = vmatpush3.bf16.msra.mxu1 (!%p297_p10), %v596_v60 }
  0x14   : > { %2291 = vmatpush3.bf16.msra.mxu0 (!%p297_p10), %v430_v2 }
  0x15   : > { %2551 = vmatprep.subr.msk.bf16.mxu0 (!%p297_p10), %vm428_vm0, %v2132_v27 }
  0x16   : > { %s2855_s23 = scalar_select %p340_p11, %s2725_s30, 1 }
  0x18   : > { %s2165_s24 = sshll.u32 %s2855_s23, 7  ;;  %s2164_s25 = sshll.u32 %s2855_s23, 4 }
  0x19   : > { %s2863_s11 = scalar_lea.vmem %s3350_s1, %s2165_s24  ;;  %s2737_s24 = smov 96  }
  0x1a   : > { %v360_v3 = vld [vmem:[%s2863_s11] sm:$0xff]  ;;  %v361_v4 = vld [vmem:[%s2863_s11 + $0x8] sm:$0xff]  ;;  %v362_v5 = vld [vmem:[%s2863_s11 + $0x10] sm:$0xff] }
  0x1b   : > { %v376_v6 = vpack.c.bf16 %v361_v4, %v360_v3  ;;  %v363_v7 = vld [vmem:[%s2863_s11 + $0x18] sm:$0xff]  ;;  %v364_v8 = vld [vmem:[%s2863_s11 + $0x20] sm:$0xff]  ;;  %v365_v9 = vld [vmem:[%s2863_s11 + $0x28] sm:$0xff] }
  0x1c   : > { %v377_v10 = vpack.c.bf16 %v363_v7, %v362_v5  ;;  %v378_v11 = vpack.c.bf16 %v365_v9, %v364_v8  ;;  %v366_v12 = vld [vmem:[%s2863_s11 + $0x30] sm:$0xff]  ;;  %v367_v13 = vld [vmem:[%s2863_s11 + $0x38] sm:$0xff]  ;;  %v368_v14 = vld [vmem:[%s2863_s11 + $0x40] sm:$0xff] }
  0x1d   : > { %2292 = vmatprep.mubr.msk.bf16.mxu0 %vm403_vm1, %v376_v6  ;;  %v369_v15 = vld [vmem:[%s2863_s11 + $0x48] sm:$0xff]  ;;  %v379_v16 = vpack.c.bf16 %v367_v13, %v366_v12  ;;  %v370_v18 = vld [vmem:[%s2863_s11 + $0x50] sm:$0xff]  ;;  %v371_v19 = vld [vmem:[%s2863_s11 + $0x58] sm:$0xff] }
  0x1e   : > { %2293 = vmatmul.mubr.msk.bf16.vlgmr.msra.gmra.mrb[0].mxu0 %vm403_vm1, %v377_v10  ;;  %v380_v17 = vpack.c.bf16 %v369_v15, %v368_v14  ;;  %v372_v20 = vld [vmem:[%s2863_s11 + $0x60] sm:$0xff]  ;;  %v373_v21 = vld [vmem:[%s2863_s11 + $0x68] sm:$0xff]  ;;  %v381_v22 = vpack.c.bf16 %v371_v19, %v370_v18  ;;  %v374_v24 = vld [vmem:[%s2863_s11 + $0x70] sm:$0xff] }
  0x1f   : > { %2296 = vmatprep.mubr.msk.bf16.mxu0 %vm403_vm1, %v378_v11  ;;  %v382_v23 = vpack.c.bf16 %v373_v21, %v372_v20  ;;  %v375_v25 = vld [vmem:[%s2863_s11 + $0x78] sm:$0xff]  ;;  %2345 = vmatpush3.bf16.msra.mxu0 %v980_v28  ;;  %v2962_v9 = vld [vmem:[%s3355_s6 + $0x4] sm:$0xf]  ;;  %s2738_s11 = smov 88   ;;  %v2622_v13 = vld [vmem:[%s3351_s2 + $0x8] sm:$0xff]  }
  0x20   : > { %v383_v26 = vpack.c.bf16 %v375_v25, %v374_v24  ;;  %2380 = vmatprep.subr.bf16.mxu0 %v2735_v29  ;;  %2550 = vmatprep.subr.msk.bf16.mxu1 %vm428_vm0, %v2962_v9  ;;  %v2621_v11 = vld [vmem:[%s3351_s2] sm:$0xff]  }
  0x26   : > { %2297 = vmatmul.mubr.msk.bf16.gmra.mrb[4].mxu0 %vm403_vm1, %v379_v16 }
  0x27   : > { %2300 = vmatprep.mubr.msk.bf16.mxu0 %vm403_vm1, %v380_v17 }
  0x2e   : > { %2301 = vmatmul.mubr.msk.bf16.gmra.mrb[8].mxu0 %vm403_vm1, %v381_v22  ;;  %v788_v22 = vsel %vm428_vm0, %v2962_v9, 0 }
  0x2f   : > { %2304 = vmatprep.mubr.msk.bf16.mxu0 %vm403_vm1, %v382_v23  ;;  %v2141_v23 = vld [vmem:[%s3355_s6 + $0xc] sm:$0xf] }
  0x36   : > { %2305 = vmatmul.mubr.msk.bf16.gmra.mrb[12].mxu0 %vm403_vm1, %v383_v26 }
  0xf1   : > { %v2294_v30 = vpop.f32.mrb[0].mxu0 }
  0xf2   : > { %v466_v32 = vpop.f32.mrb[1].mxu0  ;;  %v475_v34 = vadd.f32 %v2294_v30, %v2104_v31 }
  0xf3   : > { %v2295_v33 = vpop.f32.mrb[2].mxu0  ;;  %v467_v37 = vadd.f32 %v2104_v31, %v466_v32 }
  0xf4   : > { %v478_v35 = vadd.f32 %v2295_v33, %v2104_v31  ;;  %v469_v36 = vpop.f32.mrb[3].mxu0 }
  0xf5   : > { %v470_v38 = vadd.f32 %v2104_v31, %v469_v36 }
  0xf6   : > { %v2898_v39 = vpack.c.bf16 %v478_v35, %v475_v34 }
  0xf7   : > { %v2900_v40 = vpack.c.bf16 %v470_v38, %v467_v37 }
  0xf8   : > { %539 = vst.msk [vmem:[#allocation3 + $0x8] sm:$0xff] %vm537_vm2, %v2898_v39 }
  0xf9   : > { %538 = vst.msk [vmem:[#allocation3] sm:$0xff] %vm537_vm2, %v2900_v40  ;;  %v2298_v41 = vpop.f32.mrb[4].mxu0  ;;  %939 = vrot.lane.b32.xlu0 %v2900_v40, %s2736_s20 }
  0xfa   : > { %v482_v42 = vpop.f32.mrb[5].mxu0  ;;  %v491_v44 = vadd.f32 %v2298_v41, %v2104_v31 }
  0xfb   : > { %v2299_v43 = vpop.f32.mrb[6].mxu0  ;;  %v483_v47 = vadd.f32 %v2104_v31, %v482_v42 }
  0xfc   : > { %v494_v45 = vadd.f32 %v2299_v43, %v2104_v31  ;;  %v485_v46 = vpop.f32.mrb[7].mxu0 }
  0xfd   : > { %v486_v48 = vadd.f32 %v2104_v31, %v485_v46  ;;  %941 = vrot.lane.b32.xlu0 %v2898_v39, %s2736_s20 }
  0xfe   : > { %v2910_v49 = vpack.c.bf16 %v494_v45, %v491_v44  ;;  %v1172_v45 = vsel %vm428_vm0, %v2141_v23, 0 }
  0xff   : > { %v2912_v50 = vpack.c.bf16 %v486_v48, %v483_v47 }
 0x100   : > { %541 = vst.msk [vmem:[#allocation3 + $0x18] sm:$0xff] %vm537_vm2, %v2910_v49 }
 0x101   : > { %540 = vst.msk [vmem:[#allocation3 + $0x10] sm:$0xff] %vm537_vm2, %v2912_v50  ;;  %v2302_v51 = vpop.f32.mrb[8].mxu0  ;;  %943 = vrot.lane.b32.xlu1 %v2912_v50, %s2736_s20 }
 0x102   : > { %v507_v52 = vadd.f32 %v2302_v51, %v2104_v31  ;;  %v498_v53 = vpop.f32.mrb[9].mxu0 }
 0x103   : > { %v499_v54 = vadd.f32 %v2104_v31, %v498_v53  ;;  %v2303_v55 = vpop.f32.mrb[10].mxu0 }
 0x104   : > { %v510_v56 = vadd.f32 %v2303_v55, %v2104_v31  ;;  %v501_v57 = vpop.f32.mrb[11].mxu0 }
 0x105   : > { %v502_v59 = vadd.f32 %v2104_v31, %v501_v57  ;;  %945 = vrot.lane.b32.xlu1 %v2910_v49, %s2736_s20 }
 0x106   : > { %v2927_v61 = vpack.c.bf16 %v510_v56, %v507_v52 }
 0x107   : > { %v2929_v62 = vpack.c.bf16 %v502_v59, %v499_v54 }
 0x108   : > { %543 = vst.msk [vmem:[#allocation3 + $0x28] sm:$0xff] %vm537_vm2, %v2927_v61 }
 0x109   : > { %542 = vst.msk [vmem:[#allocation3 + $0x20] sm:$0xff] %vm537_vm2, %v2929_v62  ;;  %v2306_v63 = vpop.f32.mrb[12].mxu0  ;;  %949 = vrot.lane.b32.xlu1 %v2927_v61, %s2736_s20  ;;  %947 = vrot.lane.b32.xlu0 %v2929_v62, %s2736_s20 }
 0x10a   : > { %v523_v0 = vadd.f32 %v2306_v63, %v2104_v31  ;;  %v514_v1 = vpop.f32.mrb[13].mxu0 }
 0x10b   : > { %v515_v2 = vadd.f32 %v2104_v31, %v514_v1  ;;  %v2307_v3 = vpop.f32.mrb[14].mxu0 }
 0x10c   : > { %v526_v4 = vadd.f32 %v2307_v3, %v2104_v31  ;;  %v517_v5 = vpop.f32.mrb[15].mxu0 }
 0x10d   : > { %v518_v6 = vadd.f32 %v2104_v31, %v517_v5 }
 0x10e   : > { %v2939_v7 = vpack.c.bf16 %v526_v4, %v523_v0 }
 0x10f   : > { %v2941_v8 = vpack.c.bf16 %v518_v6, %v515_v2 }
 0x110   : > { %545 = vst.msk [vmem:[#allocation3 + $0x38] sm:$0xff] %vm537_vm2, %v2939_v7  ;;  %953 = vrot.lane.b32.xlu1 %v2939_v7, %s2736_s20 }
 0x111   : > { %544 = vst.msk [vmem:[#allocation3 + $0x30] sm:$0xff] %vm537_vm2, %v2941_v8  ;;  %951 = vrot.lane.b32.xlu0 %v2941_v8, %s2736_s20 }
 0x114   : > { %557 = vrot.lane.b32.xlu1 %v2898_v39, %s2737_s24 }
 0x115   : > { %555 = vrot.lane.b32.xlu0 %v2900_v40, %s2737_s24 }
 0x118   : > { %561 = vrot.lane.b32.xlu1 %v2910_v49, %s2737_s24 }
 0x119   : > { %559 = vrot.lane.b32.xlu0 %v2912_v50, %s2737_s24 }
 0x11c   : > { %565 = vrot.lane.b32.xlu1 %v2927_v61, %s2737_s24 }
 0x11d   : > { %563 = vrot.lane.b32.xlu0 %v2929_v62, %s2737_s24 }
 0x120   : > { %569 = vrot.lane.b32.xlu1 %v2939_v7, %s2737_s24 }
 0x121   : > { %567 = vrot.lane.b32.xlu0 %v2941_v8, %s2737_s24 }
 0x124   : > { %749 = vrot.lane.b32.xlu1 %v2898_v39, %s2738_s11 }
 0x125   : > { %747 = vrot.lane.b32.xlu0 %v2900_v40, %s2738_s11 }
 0x128   : > { %753 = vrot.lane.b32.xlu1 %v2910_v49, %s2738_s11 }
 0x129   : > { %751 = vrot.lane.b32.xlu0 %v2912_v50, %s2738_s11 }
 0x12c   : > { %757 = vrot.lane.b32.xlu1 %v2927_v61, %s2738_s11 }
 0x12d   : > { %755 = vrot.lane.b32.xlu0 %v2929_v62, %s2738_s11 }
 0x130   : > { %761 = vrot.lane.b32.xlu1 %v2939_v7, %s2738_s11 }
 0x131   : > { %759 = vrot.lane.b32.xlu0 %v2941_v8, %s2738_s11  ;;  %s2166_s11 = sshll.u32 %s2725_s30, 8 }
 0x132   : > { %s3297_s21 = scalar_lea.hbm %s3357_s8, %s2166_s11 }
 0x134   : > { %1131 = vrot.lane.b32.xlu1 %v2900_v40, %s2739_s12 }
 0x135   : > { %712 = vrot.lane.b32.xlu0 %v2900_v40, %s2740_s14 }
 0x138   : > { %714 = vrot.lane.b32.xlu1 %v2898_v39, %s2740_s14 }
 0x139   : > { %1133 = vrot.lane.b32.xlu0 %v2898_v39, %s2739_s12 }
 0x13c   : > { %718 = vrot.lane.b32.xlu1 %v2910_v49, %s2740_s14 }
 0x13d   : > { %716 = vrot.lane.b32.xlu0 %v2912_v50, %s2740_s14 }
 0x140   : > { %722 = vrot.lane.b32.xlu1 %v2927_v61, %s2740_s14 }
 0x141   : > { %720 = vrot.lane.b32.xlu0 %v2929_v62, %s2740_s14 }
 0x144   : > { %1137 = vrot.lane.b32.xlu1 %v2910_v49, %s2739_s12 }
 0x145   : > { %1135 = vrot.lane.b32.xlu0 %v2912_v50, %s2739_s12 }
 0x148   : > { %1139 = vrot.lane.b32.xlu1 %v2929_v62, %s2739_s12 }
 0x149   : > { %724 = vrot.lane.b32.xlu0 %v2941_v8, %s2740_s14 }
 0x14c   : > { %726 = vrot.lane.b32.xlu1 %v2939_v7, %s2740_s14 }
 0x14d   : > { %1141 = vrot.lane.b32.xlu0 %v2927_v61, %s2739_s12 }
 0x150   : > { %1143 = vrot.lane.b32.xlu1 %v2941_v8, %s2739_s12 }
 0x151   : > { %904 = vrot.lane.b32.xlu0 %v2900_v40, %s2741_s16 }
 0x154   : > { %1096 = vrot.lane.b32.xlu1 %v2900_v40, %s2742_s19 }
 0x155   : > { %1145 = vrot.lane.b32.xlu0 %v2939_v7, %s2739_s12  ;;  %s347_s12 = scalar_lea.vmem %s3349_s0, %s2164_s25 }
 0x156   : > { %v1288_v24 = vld [vmem:[%s347_s12] sm:$0xff]  ;;  %v1289_v25 = vld [vmem:[%s347_s12 + $0x8] sm:$0xff] }
 0x157   : > { %v1290_v28 = vpack.c.bf16 %v1289_v25, %v1288_v24 }
 0x158   : > { %906 = vrot.lane.b32.xlu1 %v2898_v39, %s2741_s16 }
 0x15c   : > { %908 = vrot.lane.b32.xlu1 %v2912_v50, %s2741_s16 }
 0x160   : > { %910 = vrot.lane.b32.xlu1 %v2910_v49, %s2741_s16 }
 0x164   : > { %912 = vrot.lane.b32.xlu1 %v2929_v62, %s2741_s16 }
 0x168   : > { %914 = vrot.lane.b32.xlu1 %v2927_v61, %s2741_s16 }
 0x16b   : > { %v940_v10 = vpop.permute.xlu0 %939 }
 0x16c   : > { %916 = vrot.lane.b32.xlu1 %v2941_v8, %s2741_s16  ;;  %2346 = vmatprep.mubr.msk.bf16.mxu0 %vm537_vm2, %v940_v10  ;;  %v1382_v10 = vld [vmem:[#allocation3] sm:$0xff] }
 0x16f   : > { %v942_v12 = vpop.permute.xlu0 %941 }
 0x170   : > { %918 = vrot.lane.b32.xlu1 %v2939_v7, %s2741_s16  ;;  %2347 = vmatmul.mubr.msk.bf16.vlgmr.msra.gmra.mrb[16].mxu0 %vm537_vm2, %v942_v12  ;;  %v1418_v12 = vsel %vm537_vm2, %v1382_v10, 0 }
 0x171   : > { %2381 = vmatpush3.bf16.msra.mxu0 %v2621_v11 }
 0x172   : > { %2382 = vmatprep.subr.bf16.mxu0 %v2735_v29 }
 0x173   : > { %v944_v14 = vpop.permute.xlu1 %943 }
 0x174   : > { %2350 = vmatprep.mubr.msk.bf16.mxu0 %vm537_vm2, %v944_v14 }
 0x175   : > { %2383 = vmatpush3.bf16.msra.mxu0 %v2622_v13 }
 0x176   : > { %2408 = vmatprep.subr.bf16.mxu0 %v2735_v29 }
 0x177   : > { %v946_v15 = vpop.permute.xlu1 %945 }
 0x178   : > { %2351 = vmatmul.mubr.msk.bf16.gmra.mrb[20].mxu0 %vm537_vm2, %v946_v15 }
 0x17b   : > { %v948_v16 = vpop.permute.xlu0 %947  ;;  %v950_v17 = vpop.permute.xlu1 %949 }
 0x17c   : > { %2354 = vmatprep.mubr.msk.bf16.mxu0 %vm537_vm2, %v948_v16  ;;  %v1383_v16 = vld [vmem:[#allocation3 + $0x8] sm:$0xff] }
 0x180   : > { %2355 = vmatmul.mubr.msk.bf16.gmra.mrb[24].mxu0 %vm537_vm2, %v950_v17 }
 0x182   : > { %v954_v18 = vpop.permute.xlu1 %953 }
 0x183   : > { %v952_v19 = vpop.permute.xlu0 %951 }
 0x184   : > { %2358 = vmatprep.mubr.msk.bf16.mxu0 %vm537_vm2, %v952_v19 }
 0x186   : > { %v558_v20 = vpop.permute.xlu1 %557 }
 0x187   : > { %v556_v21 = vpop.permute.xlu0 %555 }
 0x188   : > { %2310 = vmatprep.mubr.msk.bf16.mxu1 %vm537_vm2, %v556_v21  ;;  %2359 = vmatmul.mubr.msk.bf16.gmra.mrb[28].mxu0 %vm537_vm2, %v954_v18  ;;  %v1421_v18 = vsel %vm537_vm2, %v1383_v16, 0 }
 0x189   : > { %2311 = vmatmul.mubr.msk.bf16.vlgmr.msra.gmra.mrb[0].mxu1 %vm537_vm2, %v558_v20  ;;  %2384 = vmatprep.mubr.msk.bf16.mxu0 %vm2743_vm3, %v2735_v29 }
 0x18a   : > { %v562_v26 = vpop.permute.xlu1 %561  ;;  %2327 = vmatpush3.bf16.msra.mxu1 %v788_v22  ;;  %v1384_v22 = vld [vmem:[#allocation3 + $0x10] sm:$0xff] }
 0x18b   : > { %v560_v27 = vpop.permute.xlu0 %559  ;;  %2552 = vmatprep.subr.msk.bf16.mxu1 %vm428_vm0, %v2141_v23  ;;  %v1424_v24 = vsel %vm537_vm2, %v1384_v22, 0 }
 0x18c   : > { %2314 = vmatprep.mubr.msk.bf16.mxu1 %vm537_vm2, %v560_v27 }
 0x18e   : > { %v566_v30 = vpop.permute.xlu1 %565 }
 0x18f   : > { %v564_v31 = vpop.permute.xlu0 %563 }
 0x190   : > { %2385 = vmatmul.mubr.msk.bf16.vlgmr.msra.gmra.mrb[32].mxu0 %vm703_vm4, %v1290_v28  ;;  %v1385_v28 = vld [vmem:[#allocation3 + $0x18] sm:$0xff] }
 0x191   : > { %2315 = vmatmul.mubr.msk.bf16.gmra.mrb[4].mxu1 %vm537_vm2, %v562_v26  ;;  %2424 = vmatprep.mubr.msk.bf16.mxu0 %vm2743_vm3, %v2735_v29 }
 0x192   : > { %v570_v32 = vpop.permute.xlu1 %569  ;;  %2318 = vmatprep.mubr.msk.bf16.mxu1 %vm537_vm2, %v564_v31 }
 0x193   : > { %v568_v33 = vpop.permute.xlu0 %567 }
 0x196   : > { %v750_v34 = vpop.permute.xlu1 %749 }
 0x197   : > { %v748_v35 = vpop.permute.xlu0 %747 }
 0x199   : > { %2319 = vmatmul.mubr.msk.bf16.gmra.mrb[8].mxu1 %vm537_vm2, %v566_v30 }
 0x19a   : > { %v754_v36 = vpop.permute.xlu1 %753  ;;  %2322 = vmatprep.mubr.msk.bf16.mxu1 %vm537_vm2, %v568_v33 }
 0x19b   : > { %v752_v37 = vpop.permute.xlu0 %751 }
 0x19e   : > { %v758_v38 = vpop.permute.xlu1 %757 }
 0x19f   : > { %v756_v40 = vpop.permute.xlu0 %755 }
 0x1a1   : > { %2323 = vmatmul.mubr.msk.bf16.gmra.mrb[12].mxu1 %vm537_vm2, %v570_v32  ;;  %v1427_v32 = vsel %vm537_vm2, %v1385_v28, 0 }
 0x1a2   : > { %v762_v41 = vpop.permute.xlu1 %761  ;;  %2328 = vmatprep.mubr.msk.bf16.mxu1 %vm537_vm2, %v748_v35  ;;  %v1386_v35 = vld [vmem:[#allocation3 + $0x20] sm:$0xff] }
 0x1a3   : > { %v760_v42 = vpop.permute.xlu0 %759 }
 0x1a6   : > { %v1132_v43 = vpop.permute.xlu1 %1131 }
 0x1a7   : > { %v713_v44 = vpop.permute.xlu0 %712 }
 0x1a8   : > { %737 = vst.msk [vmem:[#allocation3 + $0x40] sm:$0xff] %vm537_vm2, %v713_v44 }
 0x1a9   : > { %2329 = vmatmul.mubr.msk.bf16.vlgmr.msra.gmra.mrb[16].mxu1 %vm537_vm2, %v750_v34 }
 0x1aa   : > { %v715_v46 = vpop.permute.xlu1 %714  ;;  %2332 = vmatprep.mubr.msk.bf16.mxu1 %vm537_vm2, %v752_v37  ;;  %2363 = vmatpush3.bf16.msra.mxu1 %v1172_v45  ;;  %v1430_v37 = vsel %vm537_vm2, %v1386_v35, 0 }
 0x1ab   : > { %738 = vst.msk [vmem:[#allocation3 + $0x48] sm:$0xff] %vm537_vm2, %v715_v46  ;;  %v1134_v47 = vpop.permute.xlu0 %1133  ;;  %2388 = vmatprep.subr.bf16.mxu1 %v2735_v29 }
 0x1ae   : > { %v719_v48 = vpop.permute.xlu1 %718 }
 0x1af   : > { %740 = vst.msk [vmem:[#allocation3 + $0x58] sm:$0xff] %vm537_vm2, %v719_v48  ;;  %v717_v51 = vpop.permute.xlu0 %716  ;;  %v1390_v52 = vld [vmem:[#allocation3 + $0x40] sm:$0xff] }
 0x1b0   : > { %739 = vst.msk [vmem:[#allocation3 + $0x50] sm:$0xff] %vm537_vm2, %v717_v51  ;;  %v1486_v53 = vsel %vm537_vm2, %v1390_v52, 0 }
 0x1b1   : > { %2333 = vmatmul.mubr.msk.bf16.gmra.mrb[20].mxu1 %vm537_vm2, %v754_v36  ;;  %2409 = vmatpush3.bf16.xpose.msra.mxu0 %v1486_v53 }
 0x1b2   : > { %v723_v54 = vpop.permute.xlu1 %722  ;;  %2336 = vmatprep.mubr.msk.bf16.mxu1 %vm537_vm2, %v756_v40  ;;  %2410 = vmatprep.subr.bf16.mxu0 %v2735_v29  ;;  %v1391_v56 = vld [vmem:[#allocation3 + $0x48] sm:$0xff] }
 0x1b3   : > { %742 = vst.msk [vmem:[#allocation3 + $0x68] sm:$0xff] %vm537_vm2, %v723_v54  ;;  %v721_v55 = vpop.permute.xlu0 %720  ;;  %v1489_v59 = vsel %vm537_vm2, %v1391_v56, 0 }
 0x1b4   : > { %741 = vst.msk [vmem:[#allocation3 + $0x60] sm:$0xff] %vm537_vm2, %v721_v55 }
 0x1b6   : > { %v1138_v57 = vpop.permute.xlu1 %1137  ;;  %v1393_v6 = vld [vmem:[#allocation3 + $0x58] sm:$0xff] }
 0x1b7   : > { %v1136_v58 = vpop.permute.xlu0 %1135  ;;  %v1392_v0 = vld [vmem:[#allocation3 + $0x50] sm:$0xff]  ;;  %v1495_v11 = vsel %vm537_vm2, %v1393_v6, 0 }
 0x1b8   : > { %v1492_v3 = vsel %vm537_vm2, %v1392_v0, 0 }
 0x1b9   : > { %2337 = vmatmul.mubr.msk.bf16.gmra.mrb[24].mxu1 %vm537_vm2, %v758_v38  ;;  %2411 = vmatpush3.bf16.xpose.msra.mxu0 %v1489_v59  ;;  %v1387_v38 = vld [vmem:[#allocation3 + $0x28] sm:$0xff] }
 0x1ba   : > { %v1140_v60 = vpop.permute.xlu1 %1139  ;;  %2340 = vmatprep.mubr.msk.bf16.mxu1 %vm537_vm2, %v760_v42  ;;  %2412 = vmatprep.subr.bf16.mxu0 %v2735_v29  ;;  %v1395_v20 = vld [vmem:[#allocation3 + $0x68] sm:$0xff]  ;;  %v1433_v40 = vsel %vm537_vm2, %v1387_v38, 0 }
 0x1bb   : > { %v725_v63 = vpop.permute.xlu0 %724  ;;  %v1394_v14 = vld [vmem:[#allocation3 + $0x60] sm:$0xff]  ;;  %v1501_v23 = vsel %vm537_vm2, %v1395_v20, 0 }
 0x1bc   : > { %743 = vst.msk [vmem:[#allocation3 + $0x70] sm:$0xff] %vm537_vm2, %v725_v63  ;;  %v1498_v17 = vsel %vm537_vm2, %v1394_v14, 0 }
 0x1be   : > { %v727_v1 = vpop.permute.xlu1 %726 }
 0x1bf   : > { %744 = vst.msk [vmem:[#allocation3 + $0x78] sm:$0xff] %vm537_vm2, %v727_v1  ;;  %v1142_v2 = vpop.permute.xlu0 %1141 }
 0x1c1   : > { %2341 = vmatmul.mubr.msk.bf16.gmra.mrb[28].mxu1 %vm537_vm2, %v762_v41  ;;  %2413 = vmatpush3.bf16.xpose.msra.mxu0 %v1492_v3  ;;  %v1388_v41 = vld [vmem:[#allocation3 + $0x30] sm:$0xff] }
 0x1c2   : > { %v1144_v4 = vpop.permute.xlu1 %1143  ;;  %2364 = vmatprep.mubr.msk.bf16.mxu1 %vm537_vm2, %v1132_v43  ;;  %2414 = vmatprep.subr.bf16.mxu0 %v2735_v29  ;;  %v1436_v42 = vsel %vm537_vm2, %v1388_v41, 0  ;;  %v1389_v43 = vld [vmem:[#allocation3 + $0x38] sm:$0xff] }
 0x1c3   : > { %v905_v5 = vpop.permute.xlu0 %904  ;;  %v1396_v26 = vld [vmem:[#allocation3 + $0x70] sm:$0xff]  ;;  %v1439_v44 = vsel %vm537_vm2, %v1389_v43, 0 }
 0x1c4   : > { %929 = vst.msk [vmem:[#allocation3 + $0x80] sm:$0xff] %vm537_vm2, %v905_v5  ;;  %v1504_v31 = vsel %vm537_vm2, %v1396_v26, 0 }
 0x1c6   : > { %v1097_v9 = vpop.permute.xlu1 %1096  ;;  %v1397_v34 = vld [vmem:[#allocation3 + $0x78] sm:$0xff] }
 0x1c7   : > { %1121 = vst.msk [vmem:[#allocation3 + $0xc0] sm:$0xff] %vm537_vm2, %v1097_v9  ;;  %v1146_v30 = vpop.permute.xlu0 %1145  ;;  %v1507_v36 = vsel %vm537_vm2, %v1397_v34, 0 }
 0x1c9   : > { %2365 = vmatmul.mubr.msk.bf16.vlgmr.msra.gmra.mrb[32].mxu1 %vm537_vm2, %v1134_v47  ;;  %2415 = vmatpush3.bf16.xpose.msra.mxu0 %v1495_v11 }
 0x1ca   : > { %2389 = vmatpush3.bf16.xpose.msra.mxu1 %v1418_v12  ;;  %v907_v13 = vpop.permute.xlu1 %906  ;;  %2368 = vmatprep.mubr.msk.bf16.mxu1 %vm537_vm2, %v1136_v58 }
 0x1cb   : > { %930 = vst.msk [vmem:[#allocation3 + $0x88] sm:$0xff] %vm537_vm2, %v907_v13  ;;  %2390 = vmatprep.subr.bf16.mxu1 %v2735_v29  ;;  %2416 = vmatprep.subr.bf16.mxu0 %v2735_v29 }
 0x1ce   : > { %v909_v15 = vpop.permute.xlu1 %908 }
 0x1cf   : > { %931 = vst.msk [vmem:[#allocation3 + $0x90] sm:$0xff] %vm537_vm2, %v909_v15 }
 0x1d1   : > { %2369 = vmatmul.mubr.msk.bf16.gmra.mrb[36].mxu1 %vm537_vm2, %v1138_v57  ;;  %2417 = vmatpush3.bf16.xpose.msra.mxu0 %v1498_v17  ;;  %v2150_v17 = vld [vmem:[%s3352_s3] ss:$0 sm:$0xff] }
 0x1d2   : > { %2391 = vmatpush3.bf16.xpose.msra.mxu1 %v1421_v18  ;;  %v911_v19 = vpop.permute.xlu1 %910  ;;  %2372 = vmatprep.mubr.msk.bf16.mxu1 %vm537_vm2, %v1140_v60 }
 0x1d3   : > { %932 = vst.msk [vmem:[#allocation3 + $0x98] sm:$0xff] %vm537_vm2, %v911_v19  ;;  %2392 = vmatprep.subr.bf16.mxu1 %v2735_v29  ;;  %2418 = vmatprep.subr.bf16.mxu0 %v2735_v29 }
 0x1d6   : > { %v913_v21 = vpop.permute.xlu1 %912 }
 0x1d7   : > { %933 = vst.msk [vmem:[#allocation3 + $0xa0] sm:$0xff] %vm537_vm2, %v913_v21 }
 0x1d9   : > { %2373 = vmatmul.mubr.msk.bf16.gmra.mrb[40].mxu1 %vm537_vm2, %v1142_v2  ;;  %2419 = vmatpush3.bf16.xpose.msra.mxu0 %v1501_v23 }
 0x1da   : > { %2393 = vmatpush3.bf16.xpose.msra.mxu1 %v1424_v24  ;;  %v915_v25 = vpop.permute.xlu1 %914  ;;  %2376 = vmatprep.mubr.msk.bf16.mxu1 %vm537_vm2, %v1144_v4 }
 0x1db   : > { %934 = vst.msk [vmem:[#allocation3 + $0xa8] sm:$0xff] %vm537_vm2, %v915_v25  ;;  %2394 = vmatprep.subr.bf16.mxu1 %v2735_v29  ;;  %2420 = vmatprep.subr.bf16.mxu0 %v2735_v29 }
 0x1de   : > { %v917_v27 = vpop.permute.xlu1 %916 }
 0x1df   : > { %935 = vst.msk [vmem:[#allocation3 + $0xb0] sm:$0xff] %vm537_vm2, %v917_v27 }
 0x1e1   : > { %2377 = vmatmul.mubr.msk.bf16.gmra.mrb[44].mxu1 %vm537_vm2, %v1146_v30  ;;  %2421 = vmatpush3.bf16.xpose.msra.mxu0 %v1504_v31 }
 0x1e2   : > { %2395 = vmatpush3.bf16.xpose.msra.mxu1 %v1427_v32  ;;  %v919_v33 = vpop.permute.xlu1 %918  ;;  %2422 = vmatprep.subr.bf16.mxu0 %v2735_v29 }
 0x1e3   : > { %936 = vst.msk [vmem:[#allocation3 + $0xb8] sm:$0xff] %vm537_vm2, %v919_v33  ;;  %2396 = vmatprep.subr.bf16.mxu1 %v2735_v29  ;;  %2404 = vmatprep.mubr.msk.bf16.mxu1 %vm2743_vm3, %v2735_v29 }
 0x1e9   : > { %2423 = vmatpush3.bf16.xpose.msra.mxu0 %v1507_v36 }
 0x1ea   : > { %2397 = vmatpush3.bf16.xpose.msra.mxu1 %v1430_v37  ;;  %2448 = vmatprep.subr.bf16.mxu0 %v2735_v29  ;;  %v1398_v37 = vld [vmem:[#allocation3 + $0x80] sm:$0xff] }
 0x1eb   : > { %2398 = vmatprep.subr.bf16.mxu1 %v2735_v29  ;;  %v1554_v41 = vsel %vm537_vm2, %v1398_v37, 0 }
 0x1f2   : > { %2399 = vmatpush3.bf16.xpose.msra.mxu1 %v1433_v40 }
 0x1f3   : > { %2400 = vmatprep.subr.bf16.mxu1 %v2735_v29 }
 0x1fa   : > { %2401 = vmatpush3.bf16.xpose.msra.mxu1 %v1436_v42 }
 0x1fb   : > { %2402 = vmatprep.subr.bf16.mxu1 %v2735_v29 }
 0x202   : > { %2403 = vmatpush3.bf16.xpose.msra.mxu1 %v1439_v44 }
 0x203   : > { %2428 = vmatprep.subr.bf16.mxu1 %v2735_v29 }
 0x243   : > { %v2348_v45 = vpop.f32.mrb[16].mxu0 }
 0x244   : > { %v1016_v46 = vpop.f32.mrb[17].mxu0 }
 0x245   : > { %v2349_v47 = vpop.f32.mrb[18].mxu0 }
 0x246   : > { %v1080_v48 = vpack.c.bf16 %v2349_v47, %v2348_v45  ;;  %v1019_v51 = vpop.f32.mrb[19].mxu0 }
 0x247   : > { %v1079_v52 = vpack.c.bf16 %v1019_v51, %v1016_v46  ;;  %v1399_v46 = vld [vmem:[#allocation3 + $0x88] sm:$0xff] }
 0x248   : > { %1089 = vst.msk [vmem:[#allocation4 + $0x88] sm:$0xff] %vm703_vm4, %v1080_v48  ;;  %v1557_v47 = vsel %vm537_vm2, %v1399_v46, 0 }
 0x249   : > { %1088 = vst.msk [vmem:[#allocation4 + $0x80] sm:$0xff] %vm703_vm4, %v1079_v52 }
 0x24b   : > { %v2352_v53 = vpop.f32.mrb[20].mxu0 }
 0x24c   : > { %v1032_v54 = vpop.f32.mrb[21].mxu0 }
 0x24d   : > { %v2353_v55 = vpop.f32.mrb[22].mxu0 }
 0x24e   : > { %v1082_v56 = vpack.c.bf16 %v2353_v55, %v2352_v53  ;;  %v1035_v57 = vpop.f32.mrb[23].mxu0 }
 0x24f   : > { %v1081_v58 = vpack.c.bf16 %v1035_v57, %v1032_v54  ;;  %v1400_v54 = vld [vmem:[#allocation3 + $0x90] sm:$0xff] }
 0x250   : > { %1091 = vst.msk [vmem:[#allocation4 + $0x98] sm:$0xff] %vm703_vm4, %v1082_v56 }
 0x251   : > { %1090 = vst.msk [vmem:[#allocation4 + $0x90] sm:$0xff] %vm703_vm4, %v1081_v58 }
 0x253   : > { %v2356_v59 = vpop.f32.mrb[24].mxu0 }
 0x254   : > { %v1048_v60 = vpop.f32.mrb[25].mxu0 }
 0x255   : > { %v2357_v63 = vpop.f32.mrb[26].mxu0 }
 0x256   : > { %v1084_v0 = vpack.c.bf16 %v2357_v63, %v2356_v59  ;;  %v1051_v1 = vpop.f32.mrb[27].mxu0 }
 0x257   : > { %v1083_v2 = vpack.c.bf16 %v1051_v1, %v1048_v60  ;;  %v1401_v60 = vld [vmem:[#allocation3 + $0x98] sm:$0xff] }
 0x258   : > { %1093 = vst.msk [vmem:[#allocation4 + $0xa8] sm:$0xff] %vm703_vm4, %v1084_v0 }
 0x259   : > { %1092 = vst.msk [vmem:[#allocation4 + $0xa0] sm:$0xff] %vm703_vm4, %v1083_v2 }
 0x25b   : > { %v2360_v3 = vpop.f32.mrb[28].mxu0 }
 0x25c   : > { %v2312_v4 = vpop.f32.mrb[0].mxu1  ;;  %v1064_v5 = vpop.f32.mrb[29].mxu0 }
 0x25d   : > { %v632_v6 = vpop.f32.mrb[1].mxu1  ;;  %v2361_v9 = vpop.f32.mrb[30].mxu0 }
 0x25e   : > { %v1086_v10 = vpack.c.bf16 %v2361_v9, %v2360_v3  ;;  %v2313_v11 = vpop.f32.mrb[2].mxu1  ;;  %v1067_v12 = vpop.f32.mrb[31].mxu0 }
 0x25f   : > { %v696_v13 = vpack.c.bf16 %v2313_v11, %v2312_v4  ;;  %v1085_v14 = vpack.c.bf16 %v1067_v12, %v1064_v5  ;;  %v635_v15 = vpop.f32.mrb[3].mxu1  ;;  %v1402_v4 = vld [vmem:[#allocation3 + $0xa0] sm:$0xff] }
 0x260   : > { %1095 = vst.msk [vmem:[#allocation4 + $0xb8] sm:$0xff] %vm703_vm4, %v1086_v10  ;;  %v695_v16 = vpack.c.bf16 %v635_v15, %v632_v6  ;;  %v1566_v6 = vsel %vm537_vm2, %v1402_v4, 0 }
 0x261   : > { %705 = vst.msk [vmem:[#allocation4 + $0x8] sm:$0xff] %vm703_vm4, %v696_v13  ;;  %1094 = vst.msk [vmem:[#allocation4 + $0xb0] sm:$0xff] %vm703_vm4, %v1085_v14  ;;  %v1403_v14 = vld [vmem:[#allocation3 + $0xa8] sm:$0xff] }
 0x262   : > { %704 = vst.msk [vmem:[#allocation4] sm:$0xff] %vm703_vm4, %v695_v16  ;;  %v1569_v16 = vsel %vm537_vm2, %v1403_v14, 0 }
 0x263   : > { %v1352_v18 = vpop.f32.mrb[32].mxu0 }
 0x264   : > { %v2316_v19 = vpop.f32.mrb[4].mxu1  ;;  %v2386_v20 = vpop.f32.mrb[33].mxu0  ;;  %v1353_v23 = vadd.f32 %v2150_v17, %v1352_v18 }
 0x265   : > { %v648_v21 = vpop.f32.mrb[5].mxu1  ;;  %v1355_v22 = vpop.f32.mrb[34].mxu0 }
 0x266   : > { %v1356_v24 = vadd.f32 %v2150_v17, %v1355_v22  ;;  %v2317_v25 = vpop.f32.mrb[6].mxu1  ;;  %v2387_v26 = vpop.f32.mrb[35].mxu0  ;;  %v1404_v22 = vld [vmem:[#allocation3 + $0xb0] sm:$0xff] }
 0x267   : > { %v698_v27 = vpack.c.bf16 %v2317_v25, %v2316_v19  ;;  %v651_v28 = vpop.f32.mrb[7].mxu1 }
 0x268   : > { %v1359_v30 = vpack.c.bf16 %v1356_v24, %v1353_v23  ;;  %v697_v31 = vpack.c.bf16 %v651_v28, %v648_v21  ;;  %v1572_v24 = vsel %vm537_vm2, %v1404_v22, 0 }
 0x269   : > { %707 = vst.msk [vmem:[#allocation4 + $0x18] sm:$0xff] %vm703_vm4, %v698_v27 }
 0x26a   : > { %1361 = vst.msk [vmem:[#allocation2] sm:$0xff] %vm537_vm2, %v1359_v30  ;;  %1368 = vrot.lane.b32.xlu1 %v1359_v30, %s2741_s16  ;;  %1363 = vrot.lane.b32.xlu0 %v1359_v30, %s2740_s14  ;;  %s336_s14 = sand.u32 1, %s2717_s28  }
 0x26b   : > { %706 = vst.msk [vmem:[#allocation4 + $0x10] sm:$0xff] %vm703_vm4, %v697_v31  ;;  %v1405_v31 = vld [vmem:[#allocation3 + $0xb8] sm:$0xff]  ;;  %s2099_s16 = sshll.u32 %s336_s14, 4  ;;  %s3303_s30 = scalar_lea.sflag [#allocation6], %s336_s14 }
 0x26c   : > { %v2320_v32 = vpop.f32.mrb[8].mxu1  ;;  %s338_s25 = scalar_lea.vmem [#allocation5], %s2099_s16  ;;  %s2659_s16 = sshll.u32 %s2744_s22, 4  ;;  %s2660_s16 = int_to_ptr.vmem [resolvable:$false] %s2659_s16 }
 0x26d   : > { %v664_v33 = vpop.f32.mrb[9].mxu1  ;;  %s2003_s26 = sshll.u32 %s338_s25, 4  ;;  %s3299_s26 = int_to_ptr.vmem [resolvable:$true] %s2003_s26 }
 0x26e   : > { %v2321_v34 = vpop.f32.mrb[10].mxu1  ;;  %1098 = vrot.lane.b32.xlu0 %v2898_v39, %s2742_s19  ;;  %s2655_s23 = scalar_lea.vmem %s3299_s26, 256  ;;  %p2662_p1 = scmp.lt.s32.totalorder %s3299_s26, %s2660_s16 }
 0x26f   : > { %v700_v35 = vpack.c.bf16 %v2321_v34, %v2320_v32  ;;  %v667_v36 = vpop.f32.mrb[11].mxu1  ;;  %p2656_p12 = scmp.ne.s32.totalorder %s3299_s26, %s2655_s23 }
 0x270   : > { %v699_v38 = vpack.c.bf16 %v667_v36, %v664_v33  ;;  %v1575_v33 = vsel %vm537_vm2, %v1405_v31, 0  ;;  %v1776_v22 = vld [vmem:[#allocation4 + $0x18] sm:$0xff] }
 0x271   : > { %709 = vst.msk [vmem:[#allocation4 + $0x28] sm:$0xff] %vm703_vm4, %v700_v35  ;;  %v1378_v40 = vld [vmem:[#allocation2] sm:$0xff]  ;;  %p2657_p13 = pnand %p2656_p12, %p2832_p4 }
 0x272   : > { %708 = vst.msk [vmem:[#allocation4 + $0x20] sm:$0xff] %vm703_vm4, %v699_v38  ;;  %1100 = vrot.lane.b32.xlu0 %v2912_v50, %s2742_s19  ;;  %2405 = vmatmul.mubr.msk.bf16.vlgmr.msra.gmra.mrb[48].mxu1 %vm537_vm2, %v1378_v40 }
 0x273   : > { %2429 = vmatpush3.bf16.xpose.msra.mxu1 %v1554_v41  ;;  %2444 = vmatprep.mubr.msk.bf16.mxu1 %vm2743_vm3, %v2735_v29  ;;  %p2658_p0 = pneg %p2657_p13 }
 0x274   : > { %v2324_v39 = vpop.f32.mrb[12].mxu1  ;;  %2430 = vmatprep.subr.bf16.mxu1 %v2735_v29 }
 0x275   : > { %v680_v42 = vpop.f32.mrb[13].mxu1 }
 0x276   : > { %v2325_v43 = vpop.f32.mrb[14].mxu1  ;;  %1102 = vrot.lane.b32.xlu0 %v2910_v49, %s2742_s19 }
 0x277   : > { %v702_v44 = vpack.c.bf16 %v2325_v43, %v2324_v39  ;;  %v683_v45 = vpop.f32.mrb[15].mxu1 }
 0x278   : > { %v701_v50 = vpack.c.bf16 %v683_v45, %v680_v42 }
 0x279   : > { %711 = vst.msk [vmem:[#allocation4 + $0x38] sm:$0xff] %vm703_vm4, %v702_v44 }
 0x27a   : > { %710 = vst.msk [vmem:[#allocation4 + $0x30] sm:$0xff] %vm703_vm4, %v701_v50  ;;  %1104 = vrot.lane.b32.xlu0 %v2929_v62, %s2742_s19  ;;  %v1560_v62 = vsel %vm537_vm2, %v1400_v54, 0 }
 0x27b   : > { %2431 = vmatpush3.bf16.xpose.msra.mxu1 %v1557_v47 }
 0x27c   : > { %v2330_v48 = vpop.f32.mrb[16].mxu1  ;;  %2432 = vmatprep.subr.bf16.mxu1 %v2735_v29 }
 0x27d   : > { %v824_v51 = vpop.f32.mrb[17].mxu1 }
 0x27e   : > { %v2331_v52 = vpop.f32.mrb[18].mxu1  ;;  %1106 = vrot.lane.b32.xlu0 %v2927_v61, %s2742_s19 }
 0x27f   : > { %v888_v49 = vpack.c.bf16 %v2331_v52, %v2330_v48  ;;  %v827_v53 = vpop.f32.mrb[19].mxu1  ;;  %v1406_v48 = vld [vmem:[#allocation3 + $0xc0] sm:$0xff] }
 0x280   : > { %v887_v55 = vpack.c.bf16 %v827_v53, %v824_v51  ;;  %v1622_v53 = vsel %vm537_vm2, %v1406_v48, 0 }
 0x281   : > { %897 = vst.msk [vmem:[#allocation4 + $0x48] sm:$0xff] %vm703_vm4, %v888_v49 }
 0x282   : > { %896 = vst.msk [vmem:[#allocation4 + $0x40] sm:$0xff] %vm703_vm4, %v887_v55  ;;  %1108 = vrot.lane.b32.xlu0 %v2941_v8, %s2742_s19  ;;  %v1563_v8 = vsel %vm537_vm2, %v1401_v60, 0 }
 0x283   : > { %2433 = vmatpush3.bf16.xpose.msra.mxu1 %v1560_v62 }
 0x284   : > { %v2334_v56 = vpop.f32.mrb[20].mxu1  ;;  %2434 = vmatprep.subr.bf16.mxu1 %v2735_v29 }
 0x285   : > { %v840_v57 = vpop.f32.mrb[21].mxu1 }
 0x286   : > { %v2335_v58 = vpop.f32.mrb[22].mxu1  ;;  %1110 = vrot.lane.b32.xlu0 %v2939_v7, %s2742_s19 }
 0x287   : > { %v890_v61 = vpack.c.bf16 %v2335_v58, %v2334_v56  ;;  %v843_v59 = vpop.f32.mrb[23].mxu1 }
 0x288   : > { %v889_v63 = vpack.c.bf16 %v843_v59, %v840_v57  ;;  %v1783_v62 = vld [vmem:[#allocation4 + $0x48] sm:$0xff] }
 0x289   : > { %899 = vst.msk [vmem:[#allocation4 + $0x58] sm:$0xff] %vm703_vm4, %v890_v61  ;;  %v1782_v54 = vld [vmem:[#allocation4 + $0x40] sm:$0xff] }
 0x28a   : > { %898 = vst.msk [vmem:[#allocation4 + $0x50] sm:$0xff] %vm703_vm4, %v889_v63  ;;  %1373 = vrot.lane.b32.xlu0 %v1359_v30, %s2742_s19  ;;  %s2661_s19 = scalar_lea.vmem %s2660_s16, 512 }
 0x28b   : > { %2435 = vmatpush3.bf16.xpose.msra.mxu1 %v1563_v8  ;;  %p2663_p2 = scmp.lt.s32.totalorder %s2661_s19, %s2655_s23 }
 0x28c   : > { %v2338_v0 = vpop.f32.mrb[24].mxu1  ;;  %2436 = vmatprep.subr.bf16.mxu1 %v2735_v29 }
 0x28d   : > { %v856_v1 = vpop.f32.mrb[25].mxu1  ;;  %p2664_p3 = por %p2663_p2, %p2662_p1 }
 0x28e   : > { %v2339_v2 = vpop.f32.mrb[26].mxu1 }
 0x28f   : > { %v892_v3 = vpack.c.bf16 %v2339_v2, %v2338_v0  ;;  %v859_v7 = vpop.f32.mrb[27].mxu1  ;;  %p2665_p5 = pnand %p2664_p3, %p2658_p0 }
 0x290   : > { %v891_v5 = vpack.c.bf16 %v859_v7, %v856_v1  ;;  %v1785_v60 = vld [vmem:[#allocation4 + $0x58] sm:$0xff] }
 0x291   : > { %901 = vst.msk [vmem:[#allocation4 + $0x68] sm:$0xff] %vm703_vm4, %v892_v3  ;;  %v1784_v61 = vld [vmem:[#allocation4 + $0x50] sm:$0xff] }
 0x292   : > { %900 = vst.msk [vmem:[#allocation4 + $0x60] sm:$0xff] %vm703_vm4, %v891_v5 }
 0x293   : > { %2437 = vmatpush3.bf16.xpose.msra.mxu1 %v1566_v6 }
 0x294   : > { %v2342_v9 = vpop.f32.mrb[28].mxu1  ;;  %2438 = vmatprep.subr.bf16.mxu1 %v2735_v29 }
 0x295   : > { %v872_v10 = vpop.f32.mrb[29].mxu1 }
 0x296   : > { %v2343_v11 = vpop.f32.mrb[30].mxu1 }
 0x297   : > { %v894_v12 = vpack.c.bf16 %v2343_v11, %v2342_v9  ;;  %v875_v13 = vpop.f32.mrb[31].mxu1 }
 0x298   : > { %v893_v15 = vpack.c.bf16 %v875_v13, %v872_v10  ;;  %v1787_v3 = vld [vmem:[#allocation4 + $0x68] sm:$0xff] }
 0x299   : > { %903 = vst.msk [vmem:[#allocation4 + $0x78] sm:$0xff] %vm703_vm4, %v894_v12  ;;  %v1786_v1 = vld [vmem:[#allocation4 + $0x60] sm:$0xff] }
 0x29a   : > { %902 = vst.msk [vmem:[#allocation4 + $0x70] sm:$0xff] %vm703_vm4, %v893_v15 }
 0x29b   : > { %2439 = vmatpush3.bf16.xpose.msra.mxu1 %v1569_v16 }
 0x29c   : > { %v2366_v17 = vpop.f32.mrb[32].mxu1  ;;  %2440 = vmatprep.subr.bf16.mxu1 %v2735_v29 }
 0x29d   : > { %v1208_v18 = vpop.f32.mrb[33].mxu1 }
 0x29e   : > { %v2367_v19 = vpop.f32.mrb[34].mxu1 }
 0x29f   : > { %v1272_v20 = vpack.c.bf16 %v2367_v19, %v2366_v17  ;;  %v1211_v21 = vpop.f32.mrb[35].mxu1  ;;  %v1773_v19 = vld [vmem:[#allocation4] sm:$0xff] }
 0x2a0   : > { %v1271_v23 = vpack.c.bf16 %v1211_v21, %v1208_v18  ;;  %v1789_v9 = vld [vmem:[#allocation4 + $0x78] sm:$0xff]  ;;  %v1775_v21 = vld [vmem:[#allocation4 + $0x10] sm:$0xff] }
 0x2a1   : > { %1281 = vst.msk [vmem:[#allocation4 + $0xc8] sm:$0xff] %vm703_vm4, %v1272_v20  ;;  %v1788_v6 = vld [vmem:[#allocation4 + $0x70] sm:$0xff]  ;;  %v1774_v20 = vld [vmem:[#allocation4 + $0x8] sm:$0xff] }
 0x2a2   : > { %1280 = vst.msk [vmem:[#allocation4 + $0xc0] sm:$0xff] %vm703_vm4, %v1271_v23  ;;  %v1777_v23 = vld [vmem:[#allocation4 + $0x20] sm:$0xff] }
 0x2a3   : > { %2441 = vmatpush3.bf16.xpose.msra.mxu1 %v1572_v24  ;;  %v1778_v24 = vld [vmem:[#allocation4 + $0x28] sm:$0xff] }
 0x2a4   : > { %v2370_v25 = vpop.f32.mrb[36].mxu1  ;;  %2442 = vmatprep.subr.bf16.mxu1 %v2735_v29 }
 0x2a5   : > { %v1224_v26 = vpop.f32.mrb[37].mxu1 }
 0x2a6   : > { %v2371_v27 = vpop.f32.mrb[38].mxu1 }
 0x2a7   : > { %v1274_v28 = vpack.c.bf16 %v2371_v27, %v2370_v25  ;;  %v1227_v30 = vpop.f32.mrb[39].mxu1  ;;  %v1779_v25 = vld [vmem:[#allocation4 + $0x30] sm:$0xff] }
 0x2a8   : > { %v1273_v32 = vpack.c.bf16 %v1227_v30, %v1224_v26  ;;  %v1780_v26 = vld [vmem:[#allocation4 + $0x38] sm:$0xff] }
 0x2a9   : > { %1283 = vst.msk [vmem:[#allocation4 + $0xd8] sm:$0xff] %vm703_vm4, %v1274_v28 }
 0x2aa   : > { %1282 = vst.msk [vmem:[#allocation4 + $0xd0] sm:$0xff] %vm703_vm4, %v1273_v32  ;;  %v1686_v32 = vlaneseq }
 0x2ab   : > { %2443 = vmatpush3.bf16.xpose.msra.mxu1 %v1575_v33 }
 0x2ac   : > { %v2374_v34 = vpop.f32.mrb[40].mxu1  ;;  %2468 = vmatprep.subr.bf16.mxu1 %v2735_v29  ;;  %v1687_v33 = vand.u32 127, %v1686_v32 }
 0x2ad   : > { %v1240_v35 = vpop.f32.mrb[41].mxu1 }
 0x2ae   : > { %v2375_v36 = vpop.f32.mrb[42].mxu1  ;;  %vm1688_vm5 = vcmp.lt.s32.totalorder %v1687_v33, 8 }
 0x2af   : > { %v1276_v37 = vpack.c.bf16 %v2375_v36, %v2374_v34  ;;  %v1243_v38 = vpop.f32.mrb[43].mxu1 }
 0x2b0   : > { %v1275_v40 = vpack.c.bf16 %v1243_v38, %v1240_v35 }
 0x2b1   : > { %1285 = vst.msk [vmem:[#allocation4 + $0xe8] sm:$0xff] %vm703_vm4, %v1276_v37 }
 0x2b2   : > { %1284 = vst.msk [vmem:[#allocation4 + $0xe0] sm:$0xff] %vm703_vm4, %v1275_v40 }
 0x2b4   : > { %v2378_v41 = vpop.f32.mrb[44].mxu1 }
 0x2b5   : > { %v1256_v39 = vpop.f32.mrb[45].mxu1 }
 0x2b6   : > { %v2379_v42 = vpop.f32.mrb[46].mxu1 }
 0x2b7   : > { %v1278_v43 = vpack.c.bf16 %v2379_v42, %v2378_v41  ;;  %v1259_v44 = vpop.f32.mrb[47].mxu1 }
 0x2b8   : > { %v1277_v45 = vpack.c.bf16 %v1259_v44, %v1256_v39 }
 0x2b9   : > { %1287 = vst.msk [vmem:[#allocation4 + $0xf8] sm:$0xff] %vm703_vm4, %v1278_v43 }
 0x2ba   : > { %1286 = vst.msk [vmem:[#allocation4 + $0xf0] sm:$0xff] %vm703_vm4, %v1277_v45 }
 0x2dc   : > { %v1369_v46 = vpop.permute.xlu1 %1368  ;;  %v1364_v50 = vpop.permute.xlu0 %1363 }
 0x2dd   : > { %1372 = vst.msk [vmem:[#allocation2 + $0x10] sm:$0xff] %vm537_vm2, %v1369_v46  ;;  %1367 = vst.msk [vmem:[#allocation2 + $0x8] sm:$0xff] %vm537_vm2, %v1364_v50 }
 0x2e0   : > { %v1099_v47 = vpop.permute.xlu0 %1098 }
 0x2e1   : > { %1122 = vst.msk [vmem:[#allocation3 + $0xc8] sm:$0xff] %vm537_vm2, %v1099_v47 }
 0x2e4   : > { %v1101_v51 = vpop.permute.xlu0 %1100  ;;  %v1379_v52 = vld [vmem:[#allocation2 + $0x8] sm:$0xff]  ;;  %v1380_v49 = vld [vmem:[#allocation2 + $0x10] sm:$0xff] }
 0x2e5   : > { %1123 = vst.msk [vmem:[#allocation3 + $0xd0] sm:$0xff] %vm537_vm2, %v1101_v51  ;;  %2425 = vmatmul.mubr.msk.bf16.vlgmr.msra.gmra.mrb[36].mxu0 %vm537_vm2, %v1379_v52  ;;  %2445 = vmatmul.mubr.msk.bf16.vlgmr.msra.gmra.mrb[52].mxu1 %vm537_vm2, %v1380_v49 }
 0x2e6   : > { %2449 = vmatpush3.bf16.xpose.msra.mxu0 %v1622_v53  ;;  %2469 = vmatpush3.bf16.msra.mxu1 %v1782_v54 }
 0x2e7   : > { %2470 = vmatprep.subr.bf16.mxu1 %v2735_v29  ;;  %2450 = vmatprep.subr.bf16.mxu0 %v2735_v29 }
 0x2e8   : > { %v1103_v55 = vpop.permute.xlu0 %1102  ;;  %2464 = vmatprep.mubr.msk.bf16.mxu0 %vm2743_vm3, %v2735_v29  ;;  %2484 = vmatprep.mubr.msk.bf16.mxu1 %vm2743_vm3, %v2735_v29  ;;  %v1407_v56 = vld [vmem:[#allocation3 + $0xc8] sm:$0xff] }
 0x2e9   : > { %1124 = vst.msk [vmem:[#allocation3 + $0xd8] sm:$0xff] %vm537_vm2, %v1103_v55  ;;  %v1625_v58 = vsel %vm537_vm2, %v1407_v56, 0 }
 0x2ea   : > { %2471 = vmatpush3.bf16.msra.mxu1 %v1783_v62 }
 0x2eb   : > { %2472 = vmatprep.subr.bf16.mxu1 %v2735_v29 }
 0x2ec   : > { %v1105_v57 = vpop.permute.xlu0 %1104  ;;  %v1408_v63 = vld [vmem:[#allocation3 + $0xd0] sm:$0xff] }
 0x2ed   : > { %1125 = vst.msk [vmem:[#allocation3 + $0xe0] sm:$0xff] %vm537_vm2, %v1105_v57  ;;  %v1628_v0 = vsel %vm537_vm2, %v1408_v63, 0 }
 0x2ee   : > { %2451 = vmatpush3.bf16.xpose.msra.mxu0 %v1625_v58  ;;  %2473 = vmatpush3.bf16.msra.mxu1 %v1784_v61 }
 0x2ef   : > { %2474 = vmatprep.subr.bf16.mxu1 %v2735_v29  ;;  %2452 = vmatprep.subr.bf16.mxu0 %v2735_v29 }
 0x2f0   : > { %v1107_v59 = vpop.permute.xlu0 %1106  ;;  %v1409_v7 = vld [vmem:[#allocation3 + $0xd8] sm:$0xff] }
 0x2f1   : > { %1126 = vst.msk [vmem:[#allocation3 + $0xe8] sm:$0xff] %vm537_vm2, %v1107_v59  ;;  %v1631_v5 = vsel %vm537_vm2, %v1409_v7, 0 }
 0x2f2   : > { %2475 = vmatpush3.bf16.msra.mxu1 %v1785_v60 }
 0x2f3   : > { %2476 = vmatprep.subr.bf16.mxu1 %v2735_v29 }
 0x2f4   : > { %v1109_v8 = vpop.permute.xlu0 %1108  ;;  %v1410_v10 = vld [vmem:[#allocation3 + $0xe0] sm:$0xff] }
 0x2f5   : > { %1127 = vst.msk [vmem:[#allocation3 + $0xf0] sm:$0xff] %vm537_vm2, %v1109_v8  ;;  %v1634_v11 = vsel %vm537_vm2, %v1410_v10, 0 }
 0x2f6   : > { %2453 = vmatpush3.bf16.xpose.msra.mxu0 %v1628_v0  ;;  %2477 = vmatpush3.bf16.msra.mxu1 %v1786_v1 }
 0x2f7   : > { %2478 = vmatprep.subr.bf16.mxu1 %v2735_v29  ;;  %2454 = vmatprep.subr.bf16.mxu0 %v2735_v29 }
 0x2f8   : > { %v1111_v2 = vpop.permute.xlu0 %1110  ;;  %v1411_v12 = vld [vmem:[#allocation3 + $0xe8] sm:$0xff] }
 0x2f9   : > { %1128 = vst.msk [vmem:[#allocation3 + $0xf8] sm:$0xff] %vm537_vm2, %v1111_v2  ;;  %v1637_v13 = vsel %vm537_vm2, %v1411_v12, 0 }
 0x2fa   : > { %2479 = vmatpush3.bf16.msra.mxu1 %v1787_v3 }
 0x2fb   : > { %2480 = vmatprep.subr.bf16.mxu1 %v2735_v29 }
 0x2fc   : > { %v1374_v4 = vpop.permute.xlu0 %1373  ;;  %v1412_v14 = vld [vmem:[#allocation3 + $0xf0] sm:$0xff] }
 0x2fd   : > { %1377 = vst.msk [vmem:[#allocation2 + $0x18] sm:$0xff] %vm537_vm2, %v1374_v4  ;;  %v1640_v15 = vsel %vm537_vm2, %v1412_v14, 0 }
 0x2fe   : > { %2455 = vmatpush3.bf16.xpose.msra.mxu0 %v1631_v5  ;;  %2481 = vmatpush3.bf16.msra.mxu1 %v1788_v6 }
 0x2ff   : > { %2482 = vmatprep.subr.bf16.mxu1 %v2735_v29  ;;  %2456 = vmatprep.subr.bf16.mxu0 %v2735_v29 }
 0x300   : > { %v1413_v16 = vld [vmem:[#allocation3 + $0xf8] sm:$0xff] }
 0x301   : > { %v1643_v17 = vsel %vm537_vm2, %v1413_v16, 0 }
 0x302   : > { %2483 = vmatpush3.bf16.msra.mxu1 %v1789_v9 }
 0x303   : > { %2508 = vmatprep.subr.bf16.mxu1 %v2735_v29 }
 0x304   : > { %v1381_v18 = vld [vmem:[#allocation2 + $0x18] sm:$0xff] }
 0x306   : > { %2457 = vmatpush3.bf16.xpose.msra.mxu0 %v1634_v11 }
 0x307   : > { %2458 = vmatprep.subr.bf16.mxu0 %v2735_v29 }
 0x30e   : > { %2459 = vmatpush3.bf16.xpose.msra.mxu0 %v1637_v13 }
 0x30f   : > { %2460 = vmatprep.subr.bf16.mxu0 %v2735_v29 }
 0x316   : > { %2461 = vmatpush3.bf16.xpose.msra.mxu0 %v1640_v15 }
 0x317   : > { %2462 = vmatprep.subr.bf16.mxu0 %v2735_v29 }
 0x31e   : > { %2463 = vmatpush3.bf16.xpose.msra.mxu0 %v1643_v17 }
 0x31f   : > { %2488 = vmatprep.subr.bf16.mxu0 %v2735_v29 }
 0x325   : > { %2465 = vmatmul.mubr.msk.bf16.vlgmr.msra.gmra.mrb[40].mxu0 %vm537_vm2, %v1381_v18 }
 0x326   : > { %2489 = vmatpush3.bf16.msra.mxu0 %v1773_v19  ;;  %2504 = vmatprep.mubr.msk.bf16.mxu0 %vm2743_vm3, %v2735_v29 }
 0x327   : > { %2490 = vmatprep.subr.bf16.mxu0 %v2735_v29 }
 0x32a   : > { %2491 = vmatpush3.bf16.msra.mxu0 %v1774_v20 }
 0x32b   : > { %2492 = vmatprep.subr.bf16.mxu0 %v2735_v29 }
 0x32e   : > { %2493 = vmatpush3.bf16.msra.mxu0 %v1775_v21 }
 0x32f   : > { %2494 = vmatprep.subr.bf16.mxu0 %v2735_v29 }
 0x332   : > { %2495 = vmatpush3.bf16.msra.mxu0 %v1776_v22 }
 0x333   : > { %2496 = vmatprep.subr.bf16.mxu0 %v2735_v29 }
 0x336   : > { %2497 = vmatpush3.bf16.msra.mxu0 %v1777_v23 }
 0x337   : > { %2498 = vmatprep.subr.bf16.mxu0 %v2735_v29 }
 0x33a   : > { %2499 = vmatpush3.bf16.msra.mxu0 %v1778_v24 }
 0x33b   : > { %2500 = vmatprep.subr.bf16.mxu0 %v2735_v29 }
 0x33e   : > { %2501 = vmatpush3.bf16.msra.mxu0 %v1779_v25 }
 0x33f   : > { %2502 = vmatprep.subr.bf16.mxu0 %v2735_v29 }
 0x342   : > { %2503 = vmatpush3.bf16.msra.mxu0 %v1780_v26 }
 0x343   : > { %2528 = vmatprep.subr.bf16.mxu0 %v2735_v29 }
 0x345   : > { %v1475_v27 = vpop.f32.mrb[48].mxu1 }
 0x346   : > { %v2406_v28 = vpop.f32.mrb[49].mxu1  ;;  %v1689_v45 = vsel %vm1688_vm5, %v1475_v27, -1e+30 }
 0x347   : > { %v1478_v30 = vpop.f32.mrb[50].mxu1 }
 0x348   : > { %v2407_v31 = vpop.f32.mrb[51].mxu1  ;;  %v1690_v44 = vsel %vm1688_vm5, %v1478_v30, -1e+30 }
 0x3b8   : > { %v1543_v34 = vpop.f32.mrb[36].mxu0  ;;  %v1611_v35 = vpop.f32.mrb[52].mxu1 }
 0x3b9   : > { %v2426_v36 = vpop.f32.mrb[37].mxu0  ;;  %v2446_v37 = vpop.f32.mrb[53].mxu1  ;;  %v1691_v38 = vsel %vm1688_vm5, %v1543_v34, -1e+30  ;;  %v1693_v50 = vsel %vm1688_vm5, %v1611_v35, -1e+30 }
 0x3ba   : > { %v1614_v40 = vpop.f32.mrb[54].mxu1  ;;  %1701 = vmax.xlane.f32.xlu1 %v1691_v38  ;;  %v1546_v41 = vpop.f32.mrb[38].mxu0  ;;  %v1873_v34 = vld [vmem:[#allocation4 + $0x80] sm:$0xff] }
 0x3bb   : > { %v2427_v39 = vpop.f32.mrb[39].mxu0  ;;  %v2447_v42 = vpop.f32.mrb[55].mxu1  ;;  %v1692_v43 = vsel %vm1688_vm5, %v1546_v41, -1e+30  ;;  %v1694_v46 = vsel %vm1688_vm5, %v1614_v40, -1e+30 }
 0x3bc   : > { %1703 = vmax.xlane.f32.xlu0 %v1692_v43  ;;  %v1925_v40 = vld [vmem:[#allocation4 + $0xc0] sm:$0xff]  ;;  %v1875_v41 = vld [vmem:[#allocation4 + $0x90] sm:$0xff]  ;;  %v1926_v42 = vld [vmem:[#allocation4 + $0xc8] sm:$0xff] }
 0x3be   : > { %1699 = vmax.xlane.f32.xlu1 %v1690_v44 }
 0x3c0   : > { %1697 = vmax.xlane.f32.xlu0 %v1689_v45 }
 0x3c2   : > { %1707 = vmax.xlane.f32.xlu1 %v1694_v46 }
 0x3c4   : > { %1705 = vmax.xlane.f32.xlu0 %v1693_v50 }
 0x3f8   : > { %v1679_v47 = vpop.f32.mrb[40].mxu0 }
 0x3f9   : > { %v2466_v48 = vpop.f32.mrb[41].mxu0  ;;  %v1695_v51 = vsel %vm1688_vm5, %v1679_v47, -1e+30  ;;  %v1878_v47 = vld [vmem:[#allocation4 + $0xa8] sm:$0xff] }
 0x3fa   : > { %1709 = vmax.xlane.f32.xlu0 %v1695_v51  ;;  %v1682_v52 = vpop.f32.mrb[42].mxu0  ;;  %v1929_v48 = vld [vmem:[#allocation4 + $0xe0] sm:$0xff] }
 0x3fb   : > { %v2467_v49 = vpop.f32.mrb[43].mxu0  ;;  %v1696_v53 = vsel %vm1688_vm5, %v1682_v52, -1e+30 }
 0x3fc   : > { %1711 = vmax.xlane.f32.xlu1 %v1696_v53  ;;  %v1879_v49 = vld [vmem:[#allocation4 + $0xb0] sm:$0xff] }
 0x447   : > { %v1702_v54 = vpop.xlane.xlu1 %1701 }
 0x448   : > { %v1715_v55 = vsub.f32 %v1691_v38, %v1702_v54  ;;  %v1874_v38 = vld [vmem:[#allocation4 + $0x88] sm:$0xff] }
 0x449   : > { %v1704_v62 = vpop.xlane.xlu0 %1703 }
 0x44a   : > { %v1725_v56 = vmul.f32 1.442695, %v1715_v55  ;;  %v1716_v57 = vsub.f32 %v1692_v43, %v1704_v62  ;;  %v1880_v62 = vld [vmem:[#allocation4 + $0xb8] sm:$0xff] }
 0x44b   : > { %v1700_v58 = vpop.xlane.xlu1 %1699 }
 0x44c   : > { %2623 = vpow2.f32 %v1725_v56  ;;  %v1727_v61 = vmul.f32 1.442695, %v1716_v57  ;;  %v1714_v59 = vsub.f32 %v1690_v44, %v1700_v58  ;;  %v1876_v44 = vld [vmem:[#allocation4 + $0x98] sm:$0xff]  ;;  %v1931_v56 = vld [vmem:[#allocation4 + $0xf0] sm:$0xff] }
 0x44d   : > { %v1698_v60 = vpop.xlane.xlu0 %1697  ;;  %v1932_v58 = vld [vmem:[#allocation4 + $0xf8] sm:$0xff] }
 0x44e   : > { %2625 = vpow2.f32 %v1727_v61  ;;  %v1723_v63 = vmul.f32 1.442695, %v1714_v59  ;;  %v1713_v8 = vsub.f32 %v1689_v45, %v1698_v60  ;;  %v1927_v45 = vld [vmem:[#allocation4 + $0xd0] sm:$0xff] }
 0x44f   : > { %v1708_v0 = vpop.xlane.xlu1 %1707 }
 0x450   : > { %v1721_v1 = vmul.f32 1.442695, %v1713_v8  ;;  %v1718_v2 = vsub.f32 %v1694_v46, %v1708_v0  ;;  %2627 = vpow2.f32 %v1723_v63  ;;  %v1877_v46 = vld [vmem:[#allocation4 + $0xa0] sm:$0xff] }
 0x451   : > { %v1706_v3 = vpop.xlane.xlu0 %1705 }
 0x452   : > { %2629 = vpow2.f32 %v1721_v1  ;;  %v1731_v7 = vmul.f32 1.442695, %v1718_v2  ;;  %v1717_v4 = vsub.f32 %v1693_v50, %v1706_v3  ;;  %v1928_v50 = vld [vmem:[#allocation4 + $0xd8] sm:$0xff] }
 0x454   : > { %v1729_v5 = vmul.f32 1.442695, %v1717_v4  ;;  %2631 = vpow2.f32 %v1731_v7 }
 0x456   : > { %v2624_v6 = vpop.eup %2623  ;;  %2633 = vpow2.f32 %v1729_v5 }
 0x457   : > { %1741 = vadd.xlane.f32.xlu0 %v2624_v6 }
 0x458   : > { %v2626_v9 = vpop.eup %2625 }
 0x459   : > { %1743 = vadd.xlane.f32.xlu1 %v2626_v9 }
 0x45a   : > { %v2628_v10 = vpop.eup %2627 }
 0x45c   : > { %v2630_v11 = vpop.eup %2629 }
 0x45d   : > { %1737 = vadd.xlane.f32.xlu0 %v2630_v11  ;;  %1739 = vadd.xlane.f32.xlu1 %v2628_v10 }
 0x45e   : > { %v3255_v12 = vpop.eup %2631 }
 0x460   : > { %v3257_v13 = vpop.eup %2633 }
 0x461   : > { %1745 = vadd.xlane.f32.xlu0 %v3257_v13  ;;  %1747 = vadd.xlane.f32.xlu1 %v3255_v12 }
 0x487   : > { %v1710_v14 = vpop.xlane.xlu0 %1709 }
 0x488   : > { %v1719_v15 = vsub.f32 %v1695_v51, %v1710_v14 }
 0x489   : > { %v1712_v16 = vpop.xlane.xlu1 %1711 }
 0x48a   : > { %v1733_v17 = vmul.f32 1.442695, %v1719_v15  ;;  %v1720_v18 = vsub.f32 %v1696_v53, %v1712_v16  ;;  %v1930_v53 = vld [vmem:[#allocation4 + $0xe8] sm:$0xff] }
 0x48c   : > { %2635 = vpow2.f32 %v1733_v17  ;;  %v1735_v19 = vmul.f32 1.442695, %v1720_v18 }
 0x48e   : > { %2637 = vpow2.f32 %v1735_v19  ;;  %v2158_v19 = vld [vmem:[%s3356_s7] ss:$0 sm:$0xff] }
 0x496   : > { %v3261_v20 = vpop.eup %2635 }
 0x497   : > { %1749 = vadd.xlane.f32.xlu0 %v3261_v20 }
 0x498   : > { %v3264_v21 = vpop.eup %2637 }
 0x499   : > { %1751 = vadd.xlane.f32.xlu1 %v3264_v21 }
 0x4e4   : > { %v1742_v22 = vpop.xlane.xlu0 %1741 }
 0x4e5   : > { %2639 = vrcp.f32 %v1742_v22 }
 0x4e6   : > { %v1744_v23 = vpop.xlane.xlu1 %1743 }
 0x4e7   : > { %2641 = vrcp.f32 %v1744_v23 }
 0x4ea   : > { %v1738_v24 = vpop.xlane.xlu0 %1737  ;;  %v1740_v25 = vpop.xlane.xlu1 %1739 }
 0x4eb   : > { %2643 = vrcp.f32 %v1738_v24 }
 0x4ec   : > { %2645 = vrcp.f32 %v1740_v25 }
 0x4ee   : > { %v1746_v39 = vpop.xlane.xlu0 %1745  ;;  %v1748_v43 = vpop.xlane.xlu1 %1747 }
 0x4ef   : > { %v2640_v26 = vpop.eup %2639  ;;  %2647 = vrcp.f32 %v1746_v39 }
 0x4f0   : > { %v1763_v28 = vmul.f32 %v2640_v26, %v2624_v6  ;;  %2649 = vrcp.f32 %v1748_v43 }
 0x4f1   : > { %v2642_v27 = vpop.eup %2641 }
 0x4f2   : > { %v1764_v30 = vmul.f32 %v2642_v27, %v2626_v9 }
 0x4f4   : > { %v1770_v31 = vpack.c.bf16 %v1764_v30, %v1763_v28 }
 0x4f5   : > { %v2644_v32 = vpop.eup %2643 }
 0x4f6   : > { %v2646_v33 = vpop.eup %2645  ;;  %2485 = vmatmul.mubr.bf16.vlgmr.msra.gmra.mrb[56].mxu1 %v1770_v31  ;;  %v1761_v35 = vmul.f32 %v2644_v32, %v2630_v11 }
 0x4f7   : > { %2509 = vmatpush3.bf16.msra.mxu1 %v1873_v34  ;;  %v1762_v36 = vmul.f32 %v2646_v33, %v2628_v10  ;;  %2524 = vmatprep.mubr.msk.bf16.mxu1 %vm2743_vm3, %v2735_v29 }
 0x4f8   : > { %2510 = vmatprep.subr.bf16.mxu1 %v2735_v29 }
 0x4f9   : > { %v1769_v37 = vpack.c.bf16 %v1762_v36, %v1761_v35  ;;  %v2648_v51 = vpop.eup %2647 }
 0x4fa   : > { %v2650_v52 = vpop.eup %2649  ;;  %v1765_v54 = vmul.f32 %v2648_v51, %v3257_v13 }
 0x4fb   : > { %2505 = vmatmul.mubr.bf16.vlgmr.msra.gmra.mrb[44].mxu0 %v1769_v37  ;;  %2511 = vmatpush3.bf16.msra.mxu1 %v1874_v38  ;;  %v1766_v55 = vmul.f32 %v2650_v52, %v3255_v12 }
 0x4fc   : > { %2529 = vmatpush3.bf16.msra.mxu0 %v1925_v40  ;;  %2512 = vmatprep.subr.bf16.mxu1 %v2735_v29 }
 0x4fd   : > { %2530 = vmatprep.subr.bf16.mxu0 %v2735_v29  ;;  %2544 = vmatprep.mubr.msk.bf16.mxu0 %vm2743_vm3, %v2735_v29  ;;  %v1771_v57 = vpack.c.bf16 %v1766_v55, %v1765_v54 }
 0x4ff   : > { %2513 = vmatpush3.bf16.msra.mxu1 %v1875_v41 }
 0x500   : > { %2531 = vmatpush3.bf16.msra.mxu0 %v1926_v42  ;;  %2514 = vmatprep.subr.bf16.mxu1 %v2735_v29 }
 0x501   : > { %2532 = vmatprep.subr.bf16.mxu0 %v2735_v29 }
 0x503   : > { %2515 = vmatpush3.bf16.msra.mxu1 %v1876_v44 }
 0x504   : > { %2533 = vmatpush3.bf16.msra.mxu0 %v1927_v45  ;;  %2516 = vmatprep.subr.bf16.mxu1 %v2735_v29 }
 0x505   : > { %2534 = vmatprep.subr.bf16.mxu0 %v2735_v29 }
 0x507   : > { %2517 = vmatpush3.bf16.msra.mxu1 %v1877_v46 }
 0x508   : > { %2535 = vmatpush3.bf16.msra.mxu0 %v1928_v50  ;;  %2518 = vmatprep.subr.bf16.mxu1 %v2735_v29 }
 0x509   : > { %2536 = vmatprep.subr.bf16.mxu0 %v2735_v29 }
 0x50b   : > { %2519 = vmatpush3.bf16.msra.mxu1 %v1878_v47 }
 0x50c   : > { %2537 = vmatpush3.bf16.msra.mxu0 %v1929_v48  ;;  %2520 = vmatprep.subr.bf16.mxu1 %v2735_v29 }
 0x50d   : > { %2538 = vmatprep.subr.bf16.mxu0 %v2735_v29 }
 0x50f   : > { %2521 = vmatpush3.bf16.msra.mxu1 %v1879_v49 }
 0x510   : > { %2539 = vmatpush3.bf16.msra.mxu0 %v1930_v53  ;;  %2522 = vmatprep.subr.bf16.mxu1 %v2735_v29 }
 0x511   : > { %2540 = vmatprep.subr.bf16.mxu0 %v2735_v29 }
 0x513   : > { %2523 = vmatpush3.bf16.msra.mxu1 %v1880_v62 }
 0x514   : > { %2541 = vmatpush3.bf16.msra.mxu0 %v1931_v56 }
 0x515   : > { %2542 = vmatprep.subr.bf16.mxu0 %v2735_v29 }
 0x516   : > { %2525 = vmatmul.mubr.bf16.vlgmr.msra.gmra.mrb[60].mxu1 %v1771_v57 }
 0x518   : > { %2543 = vmatpush3.bf16.msra.mxu0 %v1932_v58 }
 0x524   : > { %v1750_v61 = vpop.xlane.xlu0 %1749 }
 0x525   : > { %2651 = vrcp.f32 %v1750_v61 }
 0x526   : > { %v1752_v59 = vpop.xlane.xlu1 %1751 }
 0x527   : > { %2653 = vrcp.f32 %v1752_v59 }
 0x52f   : > { %v2652_v60 = vpop.eup %2651 }
 0x530   : > { %v1767_v8 = vmul.f32 %v2652_v60, %v3261_v20 }
 0x531   : > { %v2654_v63 = vpop.eup %2653 }
 0x532   : > { %v1768_v0 = vmul.f32 %v2654_v63, %v3264_v21 }
 0x534   : > { %v1772_v1 = vpack.c.bf16 %v1768_v0, %v1767_v8 }
 0x536   : > { %2545 = vmatmul.mubr.bf16.vlgmr.msra.gmra.mrb[48].mxu0 %v1772_v1 }
 0x5c9   : > { %v1824_v2 = vpop.f32.mrb[56].mxu1 }
 0x5ca   : > { %v2486_v3 = vpop.f32.mrb[57].mxu1 }
 0x5cb   : > { %v1827_v7 = vpop.f32.mrb[58].mxu1 }
 0x5cc   : > { %v2487_v29 = vpop.f32.mrb[59].mxu1 }
 0x5ce   : > { %v1865_v4 = vpop.f32.mrb[44].mxu0 }
 0x5cf   : > { %v1866_v5 = vadd.f32 %v1865_v4, %v1824_v2  ;;  %v2506_v6 = vpop.f32.mrb[45].mxu0 }
 0x5d0   : > { %v1868_v9 = vpop.f32.mrb[46].mxu0 }
 0x5d1   : > { %v1869_v10 = vadd.f32 %v1868_v9, %v1827_v7  ;;  %v2507_v11 = vpop.f32.mrb[47].mxu0 }
 0x5e9   : > { %v1915_v12 = vpop.f32.mrb[60].mxu1 }
 0x5ea   : > { %v1922_v13 = vadd.f32 %v1915_v12, %v1866_v5  ;;  %v2526_v14 = vpop.f32.mrb[61].mxu1 }
 0x5eb   : > { %v1918_v15 = vpop.f32.mrb[62].mxu1 }
 0x5ec   : > { %v1923_v16 = vadd.f32 %v1918_v15, %v1869_v10  ;;  %v2527_v17 = vpop.f32.mrb[63].mxu1 }
 0x609   : > { %v1967_v18 = vpop.f32.mrb[48].mxu0 }
 0x60a   : > { %v1974_v20 = vadd.f32 %v1967_v18, %v1922_v13  ;;  %v2546_v21 = vpop.f32.mrb[49].mxu0 }
 0x60b   : > { %v1970_v22 = vpop.f32.mrb[50].mxu0 }
 0x60c   : > { %v1983_v23 = vadd.f32 %v2158_v19, %v1974_v20  ;;  %v1975_v24 = vadd.f32 %v1970_v22, %v1923_v16  ;;  %v2547_v25 = vpop.f32.mrb[51].mxu0 }
 0x60e   : > { %1985 = vst.msk [vmem:[%s338_s25] sm:$0xff] %vm703_vm4, %v1983_v23  ;;  %v1984_v26 = vadd.f32 %v2158_v19, %v1975_v24 }
 0x610   : > { %1986 = vst.msk [vmem:[%s338_s25 + $0x8] sm:$0xff] %vm703_vm4, %v1984_v26 }
 0x611   : > { %2668 = shalt.err (!%p2665_p5)
}
 0x612   : > { %s2669_s14 = scalar_lea.hbm %s3297_s21, 256  ;;  %s2673_s11 = scalar_lea.hbm %s3357_s8, 512 }
 0x613   : > { %p2670_p6 = scmp.ne.s32.totalorder %s3297_s21, %s2669_s14  ;;  %p2674_p10 = scmp.lt.u32.totalorder %s3297_s21, %s3357_s8 }
 0x614   : > { %p2675_p11 = scmp.lt.u32.totalorder %s2673_s11, %s2669_s14  ;;  %p2677_p13 = scmp.lt.u32.totalorder %s2669_s14, %s3297_s21 }
 0x615   : > { %p2671_p7 = pnand %p2670_p6, %p2832_p4 }
 0x616   : > { %p2676_p12 = por %p2675_p11, %p2674_p10 }
 0x617   : > { %p2672_p9 = pneg %p2671_p7 }
 0x618   : > { %p2678_p0 = por %p2677_p13, %p2676_p12 }
 0x61a   : > { %p2679_p1 = pnand %p2678_p0, %p2672_p9 }
 0x61c   : > { %2682 = shalt.err (!%p2679_p1)
}
 0x61d   : > { %s2745_s23 = smov 128   ;;  %s2746_s22 = smov 8  }
 0x61e   : > { %2553 = dma.vmem_to_hbm [thread:$0]  (%p2832_p4), %s3299_s26, 256, %s3297_s21, %s3303_s30, %s2745_s23, %s2745_s23, %s2746_s22  }
 0x61f PF: > { %p2559_p2 = scmp.ge.s32.totalorder %s2733_s10, 2  ;;  %s2018_s16 = sand.u32 1, %s2713_s27  }
 0x620   : > { %s2019_s19 = scalar_lea.sflag [#allocation6], %s2018_s16 }
 0x621   : > { %p2556_p3 = pnand %p2559_p2, %p2839_p8 }
 0x623   : > { %2708 = dma.done.wait (!%p2556_p3), %s2019_s19, 256  }
 0x624   : > { %2710 = vsyncadd (!%p2556_p3), %s2019_s19, 4294967040  ;;  %s21_s10 = sadd.s32 1, %s2733_s10   ;;  %s3360_s27 = smov %s2717_s28 }
 0x625   : > { %p18_p5 = scmp.ge.s32.totalorder %s21_s10, 4   ;;  %s3361_s28 = smov %s2721_s29 }
 0x626   : > { %s3362_s29 = smov %s2845_s18  ;;  %s3363_s30 = smov %s2729_s9 }
 0x627   : > { %s3364_s9 = smov %s3366_s13  ;;  %20 = sbr.rel (!%p18_p5) target bundleno = 4 (0x4), region = 109 }
 0x62e   :  { %2024 = vsyncpa [#allocation6], 1 }
 0x62f   :  { %2026 = vsyncpa [#allocation6 + $0x1], 1 }

</bundles_post_ra>
